<compile_context>
chip_gen: v7x
topology: tpu7x:2x2x1
jax: 0.10.0
libtpu: 0.0.40
codegen_flags: <defaults>
</compile_context>

<pallas_src>
import functools

import jax
import jax.numpy as jnp
from jax.experimental import pallas as pl
from jax.experimental.pallas import tpu as pltpu


# ----------------------------------------------------------------------------
# Pallas kernel: the full TCN stack for one M-tile, fused into one call.
# ----------------------------------------------------------------------------
def _tcn_fused_kernel(x_ref, w_ref, vecs_ref, o_ref, *, dilations, c):
    """x_ref:    (M_tile, T_in, C)  f32   activation tile (M = B*N rows)
    w_ref:    (L, 2, C, 2C)      bf16  per tap k: columns = [W_filter[k] | 0.5*W_gate[k]]
    vecs_ref: (L, 2, 2C)         f32   row0 = [b_f | 0.5*b_g], row1 = [bn_scale | bn_shift]
    o_ref:    (M_tile, T_out, C) f32
    """
    h = x_ref[...].astype(jnp.float32)   # activation stays on-chip across layers
    m, t_in, _ = h.shape

    for li, d in enumerate(dilations):   # static unroll (L = blocks*layers is small)
        t_out = t_in - d
        rows = m * t_out

        # Dilated 2-tap conv (filter + gate fused into 2C=128 output columns) as
        # two accumulating bf16 MXU matmuls -- no lane concat, f32 accumulation.
        lhs0 = h[:, :t_out, :].astype(jnp.bfloat16).reshape(rows, c)
        lhs1 = h[:, d:d + t_out, :].astype(jnp.bfloat16).reshape(rows, c)
        fg = (jnp.dot(lhs0, w_ref[li, 0], preferred_element_type=jnp.float32)
              + jnp.dot(lhs1, w_ref[li, 1], preferred_element_type=jnp.float32))

        v = vecs_ref[li]                 # (2, 2C) f32
        pre = fg + v[0:1, :]             # full 128-lane bias add
        th = jnp.tanh(pre)               # one full-width EUP tanh serves both halves
        f = th[:, :c]                    # tanh(x@Wf + b_f)
        g = 0.5 * th[:, c:] + 0.5        # sigmoid(x@Wg + b_g) = 0.5*tanh((..)/2)+0.5
        y = f * g * v[1:2, :c] + v[1:2, c:]   # gate product + eval-mode BN affine (f32)
        h = y.reshape(m, t_out, c)
        t_in = t_out

    o_ref[...] = h.astype(o_ref.dtype)


def tcn_fused(x_mtc, w_all, vecs_all, dilations, m_tile=None):
    """x_mtc: (M, T_in, C) f32 -> (M, T_out, C) f32, T_out = T_in - sum(dilations)."""
    m, t_in, c = x_mtc.shape
    n_layers = w_all.shape[0]
    t_final = t_in - sum(dilations)

    if m_tile is None:
        # >= ~512 matmul rows per layer amortizes MXU fill/drain; activation tile
        # (512 * 7 * 64 * 4B ~ 0.9 MiB, double-buffered) stays far under the
        # scoped-VMEM budget on every generation (incl. v7x's 64 MiB physical).
        m_tile = min(512, max(8, m))
    m_pad = pl.cdiv(m, m_tile) * m_tile
    if m_pad != m:
        x_mtc = jnp.pad(x_mtc, ((0, m_pad - m), (0, 0), (0, 0)))
    n_blocks = m_pad // m_tile

    # Advisory cost estimate so XLA schedules the custom call sensibly.
    flops, trans = 0, 0
    t = t_in
    for d in dilations:
        to = t - d
        flops += 2 * (to * m_pad) * (2 * c) * (2 * c)   # two K=C matmuls per layer
        trans += 2 * to * m_pad * c                     # full-width tanh per layer
        t = to
    bytes_accessed = (4 * x_mtc.size + 2 * w_all.size + 4 * vecs_all.size
                      + 4 * m_pad * t_final * c)

    kern = functools.partial(_tcn_fused_kernel, dilations=tuple(dilations), c=c)
    out = pl.pallas_call(
        kern,
        out_shape=jax.ShapeDtypeStruct((m_pad, t_final, c), x_mtc.dtype),
        grid=(n_blocks,),
        in_specs=[
            pl.BlockSpec((m_tile, t_in, c), lambda i: (i, 0, 0)),
            # Constant index maps: weights/vectors DMA'd once, stay VMEM-resident.
            pl.BlockSpec((n_layers, 2, c, 2 * c), lambda i: (0, 0, 0, 0)),
            pl.BlockSpec((n_layers, 2, 2 * c), lambda i: (0, 0, 0)),
        ],
        out_specs=pl.BlockSpec((m_tile, t_final, c), lambda i: (i, 0, 0)),
        compiler_params=pltpu.CompilerParams(
            dimension_semantics=("parallel",),        # shards M across TCs on v7x
            vmem_limit_bytes=32 * 1024 * 1024),
        cost_estimate=pl.CostEstimate(
            flops=flops, transcendentals=trans, bytes_accessed=bytes_accessed),
    )(x_mtc, w_all, vecs_all)
    return out[:m] if m_pad != m else out


# ----------------------------------------------------------------------------
# Model construction (mirrors TCN.__init__ bookkeeping) + forward glue
# ----------------------------------------------------------------------------
def build_dilations(blocks, layers, kernel_size):
    dilations = []
    receptive_field = 1
    for _b in range(blocks):
        additional_scope = kernel_size - 1
        d = 1
        for _i in range(layers):
            dilations.append(d)
            d *= 2
            receptive_field += additional_scope
            additional_scope *= 2
    return dilations, receptive_field


def build_params(key, num_layers, channels):
    """Deterministic synthetic parameters, pre-packed for the fused kernel:
      w_all (L, 2, C, 2C) bf16 : per tap k, columns = [W_filter[k] | 0.5*W_gate[k]]
      vecs  (L, 2, 2C)    f32  : row0 = [b_f | 0.5*b_g], row1 = [bn_scale | bn_shift]
    The 0.5 pre-scaling of the gate path folds sigmoid(z)=0.5*tanh(z/2)+0.5 so a
    single full-width tanh in the kernel covers both nonlinearities."""
    eps = 1e-5  # BatchNorm2d default
    w_std = 1.0 / jnp.sqrt(2.0 * channels)
    w_list, v_list = [], []
    for _ in range(num_layers):
        key, *ks = jax.random.split(key, 9)
        wf = jax.random.normal(ks[0], (2, channels, channels), jnp.float32) * w_std
        bf = jax.random.normal(ks[1], (channels,), jnp.float32) * 0.05
        wg = jax.random.normal(ks[2], (2, channels, channels), jnp.float32) * w_std
        bg = jax.random.normal(ks[3], (channels,), jnp.float32) * 0.05
        gamma = 1.0 + 0.1 * jax.random.normal(ks[4], (channels,), jnp.float32)
        beta = 0.1 * jax.random.normal(ks[5], (channels,), jnp.float32)
        r_mean = 0.1 * jax.random.normal(ks[6], (channels,), jnp.float32)
        r_var = jax.random.uniform(ks[7], (channels,), jnp.float32, 0.5, 1.5)
        scale = gamma / jnp.sqrt(r_var + eps)
        shift = beta - r_mean * scale
        w_layer = jnp.stack(
            [jnp.concatenate([wf[k], 0.5 * wg[k]], axis=1) for k in range(2)], axis=0)
        w_list.append(w_layer)
        v_list.append(jnp.stack([jnp.concatenate([bf, 0.5 * bg]),
                                 jnp.concatenate([scale, shift])], axis=0))
    w_all = jnp.stack(w_list, axis=0).astype(jnp.bfloat16)
    vecs_all = jnp.stack(v_list, axis=0)
    return w_all, vecs_all


@functools.partial(jax.jit, static_argnums=(1, 4, 5))
def tcn_forward(x_bntc, num_known, w_all, vecs_all, dilations, receptive_field):
    """x_bntc: (B, N, T, C) -- same layout as the PyTorch module input (before its
    internal permute).  Returns (B, N, T', C).  Glue is reshape-only (no transposes)."""
    b, n, t, c = x_bntc.shape
    if num_known != t:
        raise ValueError("The number of known points is not equal to the receptive field!")
    if t > receptive_field:
        raise ValueError("The input sequence length is too long!")
    if t < receptive_field:
        # left-pad the time axis with zeros (matches F.pad(input, (rf-T, 0, 0, 0)))
        x_bntc = jnp.pad(x_bntc, ((0, 0), (0, 0), (receptive_field - t, 0), (0, 0)))
    h = tcn_fused(x_bntc.reshape(b * n, receptive_field, c), w_all, vecs_all, dilations)
    t_out = h.shape[1]
    return h.reshape(b, n, t_out, c)


def tcn_reference(x_bntc, w_all, vecs_all, dilations):
    """Pure-JAX f32 reference of the same math (eval-mode BN) for validation."""
    b, n, t, c = x_bntc.shape
    h = x_bntc.reshape(b * n, t, c).astype(jnp.float32)
    w = w_all.astype(jnp.float32)
    for li, d in enumerate(dilations):
        t_out = h.shape[1] - d
        fg = (jnp.einsum("mtc,cf->mtf", h[:, :t_out], w[li, 0])
              + jnp.einsum("mtc,cf->mtf", h[:, d:d + t_out], w[li, 1]))
        pre = fg + vecs_all[li, 0][None, None, :]
        f = jnp.tanh(pre[..., :c])
        g = jax.nn.sigmoid(2.0 * pre[..., c:])   # gate half was pre-scaled by 0.5
        h = f * g * vecs_all[li, 1, :c] + vecs_all[li, 1, c:]
    return h.reshape(b, n, -1, c)


# ----------------------------------------------------------------------------
if __name__ == "__main__":
    # Small, self-consistent config (in_dim == residual_channels since
    # flag_start_conv is False).  channels=64 matches the module default and
    # makes the fused filter|gate output exactly 128 lanes.
    blocks, layers, kernel_size = 2, 2, 2
    num_nodes = 8
    channels = 64
    batch = 2

    dilations, receptive_field = build_dilations(blocks, layers, kernel_size)  # [1,2,1,2], rf=7
    seq_len = receptive_field
    num_known = seq_len

    key = jax.random.PRNGKey(0)
    kx, kp = jax.random.split(key)
    x = jax.random.normal(kx, (batch, num_nodes, seq_len, channels), jnp.float32)
    w_all, vecs_all = build_params(kp, blocks * layers, channels)

    out = tcn_forward(x, num_known, w_all, vecs_all,
                      tuple(dilations), receptive_field)
    out = jax.block_until_ready(out)

    expected_t = seq_len - sum(dilations)
    assert out.shape == (batch, num_nodes, expected_t, channels), out.shape
    assert bool(jnp.all(jnp.isfinite(out)))

    # Validate against the pure-JAX f32 reference (kernel uses bf16 matmul operands).
    ref = tcn_reference(x, w_all, vecs_all, tuple(dilations))
    max_err = float(jnp.max(jnp.abs(out - ref)))
    assert max_err < 6e-2, f"max abs error {max_err}"

    print("KERNEL_OK")
</pallas_src>

<mosaic_0001>
module attributes {stable_mosaic.version = 11 : i64} {
  func.func @_tcn_fused_kernel(%arg0: i32, %arg1: memref<16x7x64xf32, #tpu.memory_space<vmem>>, %arg2: memref<4x2x64x128xbf16, #tpu.memory_space<vmem>>, %arg3: memref<4x2x128xf32, #tpu.memory_space<vmem>>, %arg4: memref<16x1x64xf32, #tpu.memory_space<vmem>>) attributes {dimension_semantics = [#tpu.dimension_semantics<parallel>], iteration_bounds = array<i64: 1>, scalar_prefetch = 0 : i64, scratch_operands = 0 : i64, tpu.core_type = #tpu.core_type<tc>, window_params = [{transform_indices = @transform_0, window_bounds = array<i64: 16, 7, 64>}, {pipeline_mode = #tpu.pipeline_mode<synchronous>, transform_indices = @transform_1, window_bounds = array<i64: 4, 2, 64, 128>}, {pipeline_mode = #tpu.pipeline_mode<synchronous>, transform_indices = @transform_2, window_bounds = array<i64: 4, 2, 128>}, {transform_indices = @transform_3, window_bounds = array<i64: 16, 1, 64>}]} {
    %c0 = arith.constant 0 : index
    %c0_0 = arith.constant 0 : index
    %c0_1 = arith.constant 0 : index
    %0 = vector.load %arg1[%c0, %c0_0, %c0_1] : memref<16x7x64xf32, #tpu.memory_space<vmem>>, vector<16x7x64xf32>
    %1 = vector.extract_strided_slice %0 {offsets = [0, 0, 0], sizes = [16, 6, 64], strides = [1, 1, 1]} : vector<16x7x64xf32> to vector<16x6x64xf32>
    %2 = arith.truncf %1 : vector<16x6x64xf32> to vector<16x6x64xbf16>
    %3 = vector.shape_cast %2 : vector<16x6x64xbf16> to vector<96x64xbf16>
    %4 = vector.extract_strided_slice %0 {offsets = [0, 1, 0], sizes = [16, 6, 64], strides = [1, 1, 1]} : vector<16x7x64xf32> to vector<16x6x64xf32>
    %5 = arith.truncf %4 : vector<16x6x64xf32> to vector<16x6x64xbf16>
    %6 = vector.shape_cast %5 : vector<16x6x64xbf16> to vector<96x64xbf16>
    %c0_2 = arith.constant 0 : index
    %c0_3 = arith.constant 0 : index
    %c0_4 = arith.constant 0 : index
    %c0_5 = arith.constant 0 : index
    %7 = vector.load %arg2[%c0_2, %c0_3, %c0_4, %c0_5] : memref<4x2x64x128xbf16, #tpu.memory_space<vmem>>, vector<1x1x64x128xbf16>
    %8 = vector.shape_cast %7 : vector<1x1x64x128xbf16> to vector<64x128xbf16>
    %cst = arith.constant dense<0.000000e+00> : vector<96x128xf32>
    %9 = tpu.matmul %3, %8, %cst {dimension_numbers = #tpu.dot_dimension_numbers<[1], [0], [0], [1], [0, 0, 1, 1], [], []>} : vector<96x64xbf16>, vector<64x128xbf16>, vector<96x128xf32> -> vector<96x128xf32>
    %c0_6 = arith.constant 0 : index
    %c1 = arith.constant 1 : index
    %c0_7 = arith.constant 0 : index
    %c0_8 = arith.constant 0 : index
    %10 = vector.load %arg2[%c0_6, %c1, %c0_7, %c0_8] : memref<4x2x64x128xbf16, #tpu.memory_space<vmem>>, vector<1x1x64x128xbf16>
    %11 = vector.shape_cast %10 : vector<1x1x64x128xbf16> to vector<64x128xbf16>
    %cst_9 = arith.constant dense<0.000000e+00> : vector<96x128xf32>
    %12 = tpu.matmul %6, %11, %cst_9 {dimension_numbers = #tpu.dot_dimension_numbers<[1], [0], [0], [1], [0, 0, 1, 1], [], []>} : vector<96x64xbf16>, vector<64x128xbf16>, vector<96x128xf32> -> vector<96x128xf32>
    %13 = arith.addf %9, %12 : vector<96x128xf32>
    %c0_10 = arith.constant 0 : index
    %c0_11 = arith.constant 0 : index
    %c0_12 = arith.constant 0 : index
    %14 = vector.load %arg3[%c0_10, %c0_11, %c0_12] : memref<4x2x128xf32, #tpu.memory_space<vmem>>, vector<1x2x128xf32>
    %15 = vector.shape_cast %14 : vector<1x2x128xf32> to vector<2x128xf32>
    %16 = vector.extract_strided_slice %15 {offsets = [0, 0], sizes = [1, 128], strides = [1, 1]} : vector<2x128xf32> to vector<1x128xf32>
    %17 = vector.broadcast %16 : vector<1x128xf32> to vector<96x128xf32>
    %18 = arith.addf %13, %17 : vector<96x128xf32>
    %19 = math.tanh %18 : vector<96x128xf32>
    %20 = vector.extract_strided_slice %19 {offsets = [0, 0], sizes = [96, 64], strides = [1, 1]} : vector<96x128xf32> to vector<96x64xf32>
    %21 = vector.extract_strided_slice %19 {offsets = [0, 64], sizes = [96, 64], strides = [1, 1]} : vector<96x128xf32> to vector<96x64xf32>
    %cst_13 = arith.constant 5.000000e-01 : f32
    %22 = vector.broadcast %cst_13 : f32 to vector<96x64xf32>
    %23 = arith.mulf %22, %21 : vector<96x64xf32>
    %cst_14 = arith.constant 5.000000e-01 : f32
    %24 = vector.broadcast %cst_14 : f32 to vector<96x64xf32>
    %25 = arith.addf %23, %24 : vector<96x64xf32>
    %26 = arith.mulf %20, %25 : vector<96x64xf32>
    %27 = vector.extract_strided_slice %15 {offsets = [1, 0], sizes = [1, 64], strides = [1, 1]} : vector<2x128xf32> to vector<1x64xf32>
    %28 = vector.broadcast %27 : vector<1x64xf32> to vector<96x64xf32>
    %29 = arith.mulf %26, %28 : vector<96x64xf32>
    %30 = vector.extract_strided_slice %15 {offsets = [1, 64], sizes = [1, 64], strides = [1, 1]} : vector<2x128xf32> to vector<1x64xf32>
    %31 = vector.broadcast %30 : vector<1x64xf32> to vector<96x64xf32>
    %32 = arith.addf %29, %31 : vector<96x64xf32>
    %33 = vector.shape_cast %32 : vector<96x64xf32> to vector<16x6x64xf32>
    %34 = vector.extract_strided_slice %33 {offsets = [0, 0, 0], sizes = [16, 4, 64], strides = [1, 1, 1]} : vector<16x6x64xf32> to vector<16x4x64xf32>
    %35 = arith.truncf %34 : vector<16x4x64xf32> to vector<16x4x64xbf16>
    %36 = vector.shape_cast %35 : vector<16x4x64xbf16> to vector<64x64xbf16>
    %37 = vector.extract_strided_slice %33 {offsets = [0, 2, 0], sizes = [16, 4, 64], strides = [1, 1, 1]} : vector<16x6x64xf32> to vector<16x4x64xf32>
    %38 = arith.truncf %37 : vector<16x4x64xf32> to vector<16x4x64xbf16>
    %39 = vector.shape_cast %38 : vector<16x4x64xbf16> to vector<64x64xbf16>
    %c1_15 = arith.constant 1 : index
    %c0_16 = arith.constant 0 : index
    %c0_17 = arith.constant 0 : index
    %c0_18 = arith.constant 0 : index
    %40 = vector.load %arg2[%c1_15, %c0_16, %c0_17, %c0_18] : memref<4x2x64x128xbf16, #tpu.memory_space<vmem>>, vector<1x1x64x128xbf16>
    %41 = vector.shape_cast %40 : vector<1x1x64x128xbf16> to vector<64x128xbf16>
    %cst_19 = arith.constant dense<0.000000e+00> : vector<64x128xf32>
    %42 = tpu.matmul %36, %41, %cst_19 {dimension_numbers = #tpu.dot_dimension_numbers<[1], [0], [0], [1], [0, 0, 1, 1], [], []>} : vector<64x64xbf16>, vector<64x128xbf16>, vector<64x128xf32> -> vector<64x128xf32>
    %c1_20 = arith.constant 1 : index
    %c1_21 = arith.constant 1 : index
    %c0_22 = arith.constant 0 : index
    %c0_23 = arith.constant 0 : index
    %43 = vector.load %arg2[%c1_20, %c1_21, %c0_22, %c0_23] : memref<4x2x64x128xbf16, #tpu.memory_space<vmem>>, vector<1x1x64x128xbf16>
    %44 = vector.shape_cast %43 : vector<1x1x64x128xbf16> to vector<64x128xbf16>
    %cst_24 = arith.constant dense<0.000000e+00> : vector<64x128xf32>
    %45 = tpu.matmul %39, %44, %cst_24 {dimension_numbers = #tpu.dot_dimension_numbers<[1], [0], [0], [1], [0, 0, 1, 1], [], []>} : vector<64x64xbf16>, vector<64x128xbf16>, vector<64x128xf32> -> vector<64x128xf32>
    %46 = arith.addf %42, %45 : vector<64x128xf32>
    %c1_25 = arith.constant 1 : index
    %c0_26 = arith.constant 0 : index
    %c0_27 = arith.constant 0 : index
    %47 = vector.load %arg3[%c1_25, %c0_26, %c0_27] : memref<4x2x128xf32, #tpu.memory_space<vmem>>, vector<1x2x128xf32>
    %48 = vector.shape_cast %47 : vector<1x2x128xf32> to vector<2x128xf32>
    %49 = vector.extract_strided_slice %48 {offsets = [0, 0], sizes = [1, 128], strides = [1, 1]} : vector<2x128xf32> to vector<1x128xf32>
    %50 = vector.broadcast %49 : vector<1x128xf32> to vector<64x128xf32>
    %51 = arith.addf %46, %50 : vector<64x128xf32>
    %52 = math.tanh %51 : vector<64x128xf32>
    %53 = vector.extract_strided_slice %52 {offsets = [0, 0], sizes = [64, 64], strides = [1, 1]} : vector<64x128xf32> to vector<64x64xf32>
    %54 = vector.extract_strided_slice %52 {offsets = [0, 64], sizes = [64, 64], strides = [1, 1]} : vector<64x128xf32> to vector<64x64xf32>
    %cst_28 = arith.constant 5.000000e-01 : f32
    %55 = vector.broadcast %cst_28 : f32 to vector<64x64xf32>
    %56 = arith.mulf %55, %54 : vector<64x64xf32>
    %cst_29 = arith.constant 5.000000e-01 : f32
    %57 = vector.broadcast %cst_29 : f32 to vector<64x64xf32>
    %58 = arith.addf %56, %57 : vector<64x64xf32>
    %59 = arith.mulf %53, %58 : vector<64x64xf32>
    %60 = vector.extract_strided_slice %48 {offsets = [1, 0], sizes = [1, 64], strides = [1, 1]} : vector<2x128xf32> to vector<1x64xf32>
    %61 = vector.broadcast %60 : vector<1x64xf32> to vector<64x64xf32>
    %62 = arith.mulf %59, %61 : vector<64x64xf32>
    %63 = vector.extract_strided_slice %48 {offsets = [1, 64], sizes = [1, 64], strides = [1, 1]} : vector<2x128xf32> to vector<1x64xf32>
    %64 = vector.broadcast %63 : vector<1x64xf32> to vector<64x64xf32>
    %65 = arith.addf %62, %64 : vector<64x64xf32>
    %66 = vector.shape_cast %65 : vector<64x64xf32> to vector<16x4x64xf32>
    %67 = vector.extract_strided_slice %66 {offsets = [0, 0, 0], sizes = [16, 3, 64], strides = [1, 1, 1]} : vector<16x4x64xf32> to vector<16x3x64xf32>
    %68 = arith.truncf %67 : vector<16x3x64xf32> to vector<16x3x64xbf16>
    %69 = vector.shape_cast %68 : vector<16x3x64xbf16> to vector<48x64xbf16>
    %70 = vector.extract_strided_slice %66 {offsets = [0, 1, 0], sizes = [16, 3, 64], strides = [1, 1, 1]} : vector<16x4x64xf32> to vector<16x3x64xf32>
    %71 = arith.truncf %70 : vector<16x3x64xf32> to vector<16x3x64xbf16>
    %72 = vector.shape_cast %71 : vector<16x3x64xbf16> to vector<48x64xbf16>
    %c2 = arith.constant 2 : index
    %c0_30 = arith.constant 0 : index
    %c0_31 = arith.constant 0 : index
    %c0_32 = arith.constant 0 : index
    %73 = vector.load %arg2[%c2, %c0_30, %c0_31, %c0_32] : memref<4x2x64x128xbf16, #tpu.memory_space<vmem>>, vector<1x1x64x128xbf16>
    %74 = vector.shape_cast %73 : vector<1x1x64x128xbf16> to vector<64x128xbf16>
    %cst_33 = arith.constant dense<0.000000e+00> : vector<48x128xf32>
    %75 = tpu.matmul %69, %74, %cst_33 {dimension_numbers = #tpu.dot_dimension_numbers<[1], [0], [0], [1], [0, 0, 1, 1], [], []>} : vector<48x64xbf16>, vector<64x128xbf16>, vector<48x128xf32> -> vector<48x128xf32>
    %c2_34 = arith.constant 2 : index
    %c1_35 = arith.constant 1 : index
    %c0_36 = arith.constant 0 : index
    %c0_37 = arith.constant 0 : index
    %76 = vector.load %arg2[%c2_34, %c1_35, %c0_36, %c0_37] : memref<4x2x64x128xbf16, #tpu.memory_space<vmem>>, vector<1x1x64x128xbf16>
    %77 = vector.shape_cast %76 : vector<1x1x64x128xbf16> to vector<64x128xbf16>
    %cst_38 = arith.constant dense<0.000000e+00> : vector<48x128xf32>
    %78 = tpu.matmul %72, %77, %cst_38 {dimension_numbers = #tpu.dot_dimension_numbers<[1], [0], [0], [1], [0, 0, 1, 1], [], []>} : vector<48x64xbf16>, vector<64x128xbf16>, vector<48x128xf32> -> vector<48x128xf32>
    %79 = arith.addf %75, %78 : vector<48x128xf32>
    %c2_39 = arith.constant 2 : index
    %c0_40 = arith.constant 0 : index
    %c0_41 = arith.constant 0 : index
    %80 = vector.load %arg3[%c2_39, %c0_40, %c0_41] : memref<4x2x128xf32, #tpu.memory_space<vmem>>, vector<1x2x128xf32>
    %81 = vector.shape_cast %80 : vector<1x2x128xf32> to vector<2x128xf32>
    %82 = vector.extract_strided_slice %81 {offsets = [0, 0], sizes = [1, 128], strides = [1, 1]} : vector<2x128xf32> to vector<1x128xf32>
    %83 = vector.broadcast %82 : vector<1x128xf32> to vector<48x128xf32>
    %84 = arith.addf %79, %83 : vector<48x128xf32>
    %85 = math.tanh %84 : vector<48x128xf32>
    %86 = vector.extract_strided_slice %85 {offsets = [0, 0], sizes = [48, 64], strides = [1, 1]} : vector<48x128xf32> to vector<48x64xf32>
    %87 = vector.extract_strided_slice %85 {offsets = [0, 64], sizes = [48, 64], strides = [1, 1]} : vector<48x128xf32> to vector<48x64xf32>
    %cst_42 = arith.constant 5.000000e-01 : f32
    %88 = vector.broadcast %cst_42 : f32 to vector<48x64xf32>
    %89 = arith.mulf %88, %87 : vector<48x64xf32>
    %cst_43 = arith.constant 5.000000e-01 : f32
    %90 = vector.broadcast %cst_43 : f32 to vector<48x64xf32>
    %91 = arith.addf %89, %90 : vector<48x64xf32>
    %92 = arith.mulf %86, %91 : vector<48x64xf32>
    %93 = vector.extract_strided_slice %81 {offsets = [1, 0], sizes = [1, 64], strides = [1, 1]} : vector<2x128xf32> to vector<1x64xf32>
    %94 = vector.broadcast %93 : vector<1x64xf32> to vector<48x64xf32>
    %95 = arith.mulf %92, %94 : vector<48x64xf32>
    %96 = vector.extract_strided_slice %81 {offsets = [1, 64], sizes = [1, 64], strides = [1, 1]} : vector<2x128xf32> to vector<1x64xf32>
    %97 = vector.broadcast %96 : vector<1x64xf32> to vector<48x64xf32>
    %98 = arith.addf %95, %97 : vector<48x64xf32>
    %99 = vector.shape_cast %98 : vector<48x64xf32> to vector<16x3x64xf32>
    %100 = vector.extract_strided_slice %99 {offsets = [0, 0, 0], sizes = [16, 1, 64], strides = [1, 1, 1]} : vector<16x3x64xf32> to vector<16x1x64xf32>
    %101 = arith.truncf %100 : vector<16x1x64xf32> to vector<16x1x64xbf16>
    %102 = vector.shape_cast %101 : vector<16x1x64xbf16> to vector<16x64xbf16>
    %103 = vector.extract_strided_slice %99 {offsets = [0, 2, 0], sizes = [16, 1, 64], strides = [1, 1, 1]} : vector<16x3x64xf32> to vector<16x1x64xf32>
    %104 = arith.truncf %103 : vector<16x1x64xf32> to vector<16x1x64xbf16>
    %105 = vector.shape_cast %104 : vector<16x1x64xbf16> to vector<16x64xbf16>
    %c3 = arith.constant 3 : index
    %c0_44 = arith.constant 0 : index
    %c0_45 = arith.constant 0 : index
    %c0_46 = arith.constant 0 : index
    %106 = vector.load %arg2[%c3, %c0_44, %c0_45, %c0_46] : memref<4x2x64x128xbf16, #tpu.memory_space<vmem>>, vector<1x1x64x128xbf16>
    %107 = vector.shape_cast %106 : vector<1x1x64x128xbf16> to vector<64x128xbf16>
    %cst_47 = arith.constant dense<0.000000e+00> : vector<16x128xf32>
    %108 = tpu.matmul %102, %107, %cst_47 {dimension_numbers = #tpu.dot_dimension_numbers<[1], [0], [0], [1], [0, 0, 1, 1], [], []>} : vector<16x64xbf16>, vector<64x128xbf16>, vector<16x128xf32> -> vector<16x128xf32>
    %c3_48 = arith.constant 3 : index
    %c1_49 = arith.constant 1 : index
    %c0_50 = arith.constant 0 : index
    %c0_51 = arith.constant 0 : index
    %109 = vector.load %arg2[%c3_48, %c1_49, %c0_50, %c0_51] : memref<4x2x64x128xbf16, #tpu.memory_space<vmem>>, vector<1x1x64x128xbf16>
    %110 = vector.shape_cast %109 : vector<1x1x64x128xbf16> to vector<64x128xbf16>
    %cst_52 = arith.constant dense<0.000000e+00> : vector<16x128xf32>
    %111 = tpu.matmul %105, %110, %cst_52 {dimension_numbers = #tpu.dot_dimension_numbers<[1], [0], [0], [1], [0, 0, 1, 1], [], []>} : vector<16x64xbf16>, vector<64x128xbf16>, vector<16x128xf32> -> vector<16x128xf32>
    %112 = arith.addf %108, %111 : vector<16x128xf32>
    %c3_53 = arith.constant 3 : index
    %c0_54 = arith.constant 0 : index
    %c0_55 = arith.constant 0 : index
    %113 = vector.load %arg3[%c3_53, %c0_54, %c0_55] : memref<4x2x128xf32, #tpu.memory_space<vmem>>, vector<1x2x128xf32>
    %114 = vector.shape_cast %113 : vector<1x2x128xf32> to vector<2x128xf32>
    %115 = vector.extract_strided_slice %114 {offsets = [0, 0], sizes = [1, 128], strides = [1, 1]} : vector<2x128xf32> to vector<1x128xf32>
    %116 = vector.broadcast %115 : vector<1x128xf32> to vector<16x128xf32>
    %117 = arith.addf %112, %116 : vector<16x128xf32>
    %118 = math.tanh %117 : vector<16x128xf32>
    %119 = vector.extract_strided_slice %118 {offsets = [0, 0], sizes = [16, 64], strides = [1, 1]} : vector<16x128xf32> to vector<16x64xf32>
    %120 = vector.extract_strided_slice %118 {offsets = [0, 64], sizes = [16, 64], strides = [1, 1]} : vector<16x128xf32> to vector<16x64xf32>
    %cst_56 = arith.constant 5.000000e-01 : f32
    %121 = vector.broadcast %cst_56 : f32 to vector<16x64xf32>
    %122 = arith.mulf %121, %120 : vector<16x64xf32>
    %cst_57 = arith.constant 5.000000e-01 : f32
    %123 = vector.broadcast %cst_57 : f32 to vector<16x64xf32>
    %124 = arith.addf %122, %123 : vector<16x64xf32>
    %125 = arith.mulf %119, %124 : vector<16x64xf32>
    %126 = vector.extract_strided_slice %114 {offsets = [1, 0], sizes = [1, 64], strides = [1, 1]} : vector<2x128xf32> to vector<1x64xf32>
    %127 = vector.broadcast %126 : vector<1x64xf32> to vector<16x64xf32>
    %128 = arith.mulf %125, %127 : vector<16x64xf32>
    %129 = vector.extract_strided_slice %114 {offsets = [1, 64], sizes = [1, 64], strides = [1, 1]} : vector<2x128xf32> to vector<1x64xf32>
    %130 = vector.broadcast %129 : vector<1x64xf32> to vector<16x64xf32>
    %131 = arith.addf %128, %130 : vector<16x64xf32>
    %132 = vector.shape_cast %131 : vector<16x64xf32> to vector<16x1x64xf32>
    %c0_58 = arith.constant 0 : index
    %c0_59 = arith.constant 0 : index
    %c0_60 = arith.constant 0 : index
    %133 = vector.load %arg4[%c0_58, %c0_59, %c0_60] : memref<16x1x64xf32, #tpu.memory_space<vmem>>, vector<16x1x64xf32>
    tpu.vector_store %arg4[%c0_58, %c0_59, %c0_60], %132 {strides = array<i32>} : memref<16x1x64xf32, #tpu.memory_space<vmem>>, vector<16x1x64xf32>,
    return
  }
  func.func @transform_0(%arg0: i32) -> (i32, i32, i32) {
    %c0_i32 = arith.constant 0 : i32
    %c0_i32_0 = arith.constant 0 : i32
    %c0_i32_1 = arith.constant 0 : i32
    return %arg0, %c0_i32, %c0_i32_0 : i32, i32, i32
  }
  func.func @transform_1(%arg0: i32) -> (i32, i32, i32, i32) {
    %c0_i32 = arith.constant 0 : i32
    %c0_i32_0 = arith.constant 0 : i32
    %c0_i32_1 = arith.constant 0 : i32
    %c0_i32_2 = arith.constant 0 : i32
    %c0_i32_3 = arith.constant 0 : i32
    return %c0_i32, %c0_i32_0, %c0_i32_1, %c0_i32_2 : i32, i32, i32, i32
  }
  func.func @transform_2(%arg0: i32) -> (i32, i32, i32) {
    %c0_i32 = arith.constant 0 : i32
    %c0_i32_0 = arith.constant 0 : i32
    %c0_i32_1 = arith.constant 0 : i32
    %c0_i32_2 = arith.constant 0 : i32
    return %c0_i32, %c0_i32_0, %c0_i32_1 : i32, i32, i32
  }
  func.func @transform_3(%arg0: i32) -> (i32, i32, i32) {
    %c0_i32 = arith.constant 0 : i32
    %c0_i32_0 = arith.constant 0 : i32
    %c0_i32_1 = arith.constant 0 : i32
    return %arg0, %c0_i32, %c0_i32_0 : i32, i32, i32
  }
}

</mosaic_0001>

<bundles_post_ra>
// kernel: tcn_forward.1
= control target key start
LH: loop header
LB: loop body
LE: loop exit
PB: predicated region body
PF: predicated region fallthrough
CT: control target
= control target key end

     0   :  { %8 = vsyncpa [#allocation3], 0  ;;  %s6863_s0 = inlined_call_operand.vmem [shape: f32[16,7,64], index: 0, kind: input, shape index: {}]   ;;  %s6864_s1 = inlined_call_operand.hbm [shape: bf16[4,2,64,128], index: 1, kind: input, shape index: {}]   ;;  %s6865_s2 = inlined_call_operand.vmem [shape: f32[4,2,128], index: 2, kind: input, shape index: {}]   ;;  %s6866_s3 = inlined_call_operand.hbm [shape: f32[16,1,64], index: 3, kind: output, shape index: {}]  }
   0x1   :  { %9 = vsyncpa [#allocation4], 0  ;;  %s5330_s12 = smov [#allocation2]   ;;  %s5282_s16 = scalar_lea.hbm %s6864_s1, 4096 }
   0x2   :  { %s17_s13 = sshll.u32 %s5330_s12, 4  ;;  %p5283_p0 = scmp.ne.s32.totalorder %s6864_s1, %s5282_s16  ;;  %s18_s13 = int_to_ptr.vmem [resolvable:$true] %s17_s13 }
   0x3   :  { %p5286_p1 = scmp.lt.u32.totalorder %s5282_s16, %s6864_s1 }
   0x5   :  { %p5288_p2 = pnand %p5286_p1, %p5283_p0 }
   0x7   :  { %5291 = shalt.err (!%p5288_p2)
}
   0x8   :  { %s5292_s21 = scalar_lea.vmem %s18_s13, 4096  ;;  %p5297_p4 = scmp.lt.s32.totalorder %s18_s13, %s18_s13 }
   0x9   :  { %p5293_p3 = scmp.ne.s32.totalorder %s18_s13, %s5292_s21  ;;  %p5298_p5 = scmp.lt.s32.totalorder %s5292_s21, %s5292_s21 }
   0xb   :  { %p5299_p6 = por %p5298_p5, %p5297_p4 }
   0xd   :  { %p5300_p7 = pnand %p5299_p6, %p5293_p3 }
   0xf   :  { %5303 = shalt.err (!%p5300_p7)
}
  0x10   :  { %s5331_s22 = smov 64   ;;  %s5332_s23 = smov 4  }
  0x11   :  { %23 = dma.hbm_to_vmem [thread:$0]  %s6864_s1, 4096, %s18_s13, [#allocation3], %s5331_s22, %s5331_s22, %s5332_s23  }
  0x12   :  { %5326 = dma.done.wait [#allocation3], 4096  }
  0x13   :  { %5327 = vsyncadd [#allocation3], 4294963200  ;;  %vm462_vm0 = vsmask.f32 256  ;;  %vm463_vm1 = vsmask.f32 1284  ;;  %v81_v2 = vlaneseq }
  0x14   :  { %vm465_vm2 = vsmask.f32 2312  ;;  %v5333_v0 = vmov 1966171168   ;;  %vm464_vm3 = vmor %vm462_vm0, %vm463_vm1  ;;  %vm467_vm5 = vsmask.f32 3340 }
  0x15   :  { %v79_v1 = vunpack.c.l.s4 %v5333_v0  ;;  %vm466_vm4 = vmor %vm464_vm3, %vm465_vm2  ;;  %v5374_v4 = vshrl.u32 %v81_v2, 7  ;;  %vm469_vm7 = vsmask.f32 4368  ;;  %v5194_v5 = vld [vmem:[#allocation2 + $0x20] sm:$0xff]   ;;  %v5195_v6 = vld [vmem:[#allocation2 + $0x28] sm:$0xff]   ;;  %vm1212_vm15 = vcmask 523264  }
  0x16   :  { %vm468_vm6 = vmor %vm466_vm4, %vm467_vm5  ;;  %5028 = vmatprep.subr.bf16.mxu0 %v5194_v5  ;;  %vm471_vm9 = vsmask.f32 5396  ;;  %v5196_v7 = vld [vmem:[#allocation2 + $0x30] sm:$0xff]   ;;  %v30_v9 = vld [vmem:[%s6863_s0] sm:$0x7f]  ;;  %vm5336_vm0 = vmmov 0  }
  0x17   :  { %v80_v3 = vunpack.c.0.s8 %v79_v1  ;;  %6877 = vst [vmem:[#allocation8_spill] sm:$0xff] %v5374_v4  ;;  %vm470_vm8 = vmor %vm468_vm6, %vm469_vm7  ;;  %5029 = vmatpush3.bf16.msra.mxu0 %v5194_v5  ;;  %v31_v10 = vld [vmem:[%s6863_s0 + $0x8] sm:$0x7f]  ;;  %v32_v11 = vld [vmem:[%s6863_s0 + $0x10] sm:$0x7f]  ;;  %v46_v13 = vpack.c.bf16 %v30_v9, %v30_v9  ;;  %vm4399_vm1 = vcmask 1041409  }
  0x18   :  { %5030 = vmatprep.subr.bf16.mxu0 %v5195_v6  ;;  %v33_v12 = vld [vmem:[%s6863_s0 + $0x18] sm:$0x7f]  ;;  %v47_v14 = vpack.c.bf16 %v31_v10, %v31_v10  ;;  %v48_v15 = vpack.c.bf16 %v32_v11, %v32_v11  ;;  %vm5391_vm10 = vmor %vm470_vm8, %vm471_vm9  ;;  %vm473_vm11 = vsmask.f32 6424  ;;  %v5401_v21 = vld [vmem:[%s6863_s0 + $0x20] sm:$0x7f] }
  0x19   :  { %v5377_v8 = vsub.s32 %v80_v3, %v5374_v4  ;;  %v49_v16 = vpack.c.bf16 %v33_v12, %v33_v12  ;;  %v5406_v22 = vld [vmem:[%s6863_s0 + $0x28] sm:$0x7f]  ;;  %v5197_v23 = vld [vmem:[#allocation2 + $0x38] sm:$0xff]   ;;  %vm475_vm12 = vsmask.f32 7452  ;;  %v50_v25 = vpack.c.bf16 %v5401_v21, %v5401_v21  ;;  %vm474_vm13 = vmor %vm5391_vm10, %vm473_vm11 }
  0x1a   :  { %v51_v26 = vpack.c.bf16 %v5406_v22, %v5406_v22  ;;  %vm5450_vm14 = vmor %vm474_vm13, %vm475_vm12  ;;  %v5456_v44 = vld [vmem:[#allocation2] sm:$0xff]   ;;  %vm4402_vm2 = vcmask 1042434   ;;  %vm4405_vm3 = vcmask 1043459   ;;  %vm4408_vm4 = vcmask 1044484  }
  0x1b   :  { %5031 = vmatpush3.bf16.msra.mxu0 %v5195_v6  ;;  %v84_v18 = vrot.slane %v46_v13, %v5377_v8  ;;  %v107_v19 = vrot.slane %v47_v14, %v5377_v8  ;;  %v130_v20 = vrot.slane %v48_v15, %v5377_v8  ;;  %v153_v24 = vrot.slane %v49_v16, %v5377_v8 }
  0x1c   :  { %5032 = vmatprep.subr.bf16.mxu0 %v5196_v7  ;;  %v176_v17 = vrot.slane %v50_v25, %v5377_v8  ;;  %vm4411_vm5 = vcmask 1045509   ;;  %vm4414_vm6 = vcmask 1046534   ;;  %vm4417_vm7 = vcmask 1047559  }
  0x1d   :  { %v85_v27 = vcombine.high %v84_v18, %v84_v18  ;;  %v5414_v28 = vrot.slane %v84_v18, %v5377_v8  ;;  %v108_v29 = vcombine.high %v107_v19, %v107_v19  ;;  %v5417_v30 = vrot.slane %v107_v19, %v5377_v8 }
  0x1e   :  { %v131_v31 = vcombine.high %v130_v20, %v130_v20  ;;  %v5423_v32 = vrot.slane %v130_v20, %v5377_v8  ;;  %v5426_v33 = vrot.slane %v153_v24, %v5377_v8  ;;  %v154_v34 = vcombine.high %v153_v24, %v153_v24 }
  0x1f   :  { %5033 = vmatpush3.bf16.msra.mxu0 %v5196_v7  ;;  %v5429_v35 = vrot.slane %v85_v27, %v5377_v8  ;;  %v5433_v36 = vcombine.high %v5414_v28, %v5414_v28  ;;  %v5436_v37 = vrot.slane %v108_v29, %v5377_v8  ;;  %v5440_v38 = vcombine.high %v5417_v30, %v5417_v30 }
  0x20   :  { %5034 = vmatprep.subr.bf16.mxu0 %v5197_v23  ;;  %v5443_v39 = vrot.slane %v131_v31, %v5377_v8  ;;  %v5447_v40 = vcombine.high %v5423_v32, %v5423_v32  ;;  %v478_v42 = vshrl.u32 %v5414_v28, 16  ;;  %v503_v43 = vshrl.u32 %v5417_v30, 16 }
  0x21   :  { %v446_v45 = vcombine.high %v5429_v35, %v5429_v35  ;;  %v447_v46 = vcombine.high %v5436_v37, %v5436_v37  ;;  %v483_v47 = vshll.u32 %v5429_v35, 16  ;;  %v486_v48 = vshrl.u32 %v5429_v35, 16 }
  0x22   :  { %v491_v49 = vshll.u32 %v5433_v36, 16  ;;  %v494_v50 = vshrl.u32 %v5433_v36, 16  ;;  %v508_v51 = vshll.u32 %v5436_v37, 16  ;;  %v511_v52 = vshrl.u32 %v5436_v37, 16 }
  0x23   :  { %5035 = vmatpush3.bf16.msra.mxu0 %v5197_v23  ;;  %v485_v53 = vsel %vm5450_vm14, %v478_v42, %v483_v47  ;;  %v499_v54 = vshll.u32 %v446_v45, 16  ;;  %v516_v55 = vshll.u32 %v5440_v38, 16  ;;  %v519_v56 = vshrl.u32 %v5440_v38, 16 }
  0x24   :  { %v493_v57 = vsel %vm5450_vm14, %v486_v48, %v491_v49  ;;  %v510_v58 = vsel %vm5450_vm14, %v503_v43, %v508_v51  ;;  %v524_v59 = vshll.u32 %v447_v46, 16  ;;  %v528_v60 = vshrl.u32 %v5423_v32, 16  ;;  %5048 = vmatprep.subr.bf16.mxu0 %v5456_v44 }
  0x25   :  { %v501_v61 = vsel %vm5450_vm14, %v494_v50, %v499_v54  ;;  %v518_v62 = vsel %vm5450_vm14, %v511_v52, %v516_v55  ;;  %v533_v63 = vshll.u32 %v5443_v39, 16  ;;  %v536_v0 = vshrl.u32 %v5443_v39, 16  ;;  %v36_v55 = vld [vmem:[%s6863_s0 + $0x30] sm:$0x7f] }
  0x26   :  { %v526_v1 = vsel %vm5450_vm14, %v519_v56, %v524_v59  ;;  %v541_v2 = vshll.u32 %v5447_v40, 16  ;;  %v894_v3 = vcombine.low %v485_v53, %v493_v57  ;;  %v895_v5 = vcombine.low %v501_v61, %v510_v58  ;;  %v37_v56 = vld [vmem:[%s6863_s0 + $0x38] sm:$0x7f] }
  0x27   :  { %v535_v6 = vsel %vm5450_vm14, %v528_v60, %v533_v63  ;;  %v896_v7 = vcombine.low %v518_v62, %v526_v1  ;;  %v5492_v10 = vrot.slane %v154_v34, %v5377_v8  ;;  %v5500_v14 = vcombine.high %v5426_v33, %v5426_v33 }
  0x28   :  { %v543_v11 = vsel %vm5450_vm14, %v536_v0, %v541_v2  ;;  %v904_v12 = vrot.slane %v894_v3, %v5377_v8  ;;  %v911_v13 = vrot.slane %v895_v5, %v5377_v8  ;;  %v199_v18 = vrot.slane %v51_v26, %v5377_v8 }
  0x29   :  { %v897_v15 = vcombine.low %v535_v6, %v543_v11  ;;  %v918_v16 = vrot.slane %v896_v7, %v5377_v8  ;;  %v448_v20 = vcombine.high %v5443_v39, %v5443_v39  ;;  %v449_v21 = vcombine.high %v5492_v10, %v5492_v10 }
  0x2a   :  { %v926_v19 = vcombine.low %v904_v12, %v911_v13  ;;  %v544_v22 = vshrl.u32 %v5447_v40, 16  ;;  %v177_v24 = vcombine.high %v176_v17, %v176_v17  ;;  %v5512_v27 = vrot.slane %v176_v17, %v5377_v8 }
  0x2b   :  { %v925_v23 = vrot.slane %v897_v15, %v5377_v8  ;;  %v200_v29 = vcombine.high %v199_v18, %v199_v18  ;;  %v5516_v26 = vrot.slane %v199_v18, %v5377_v8  ;;  %v549_v31 = vshll.u32 %v448_v20, 16 }
  0x2c   :  { %v934_v25 = vrot.slane %v926_v19, %v5377_v8  ;;  %v553_v34 = vshrl.u32 %v5426_v33, 16  ;;  %v5520_v43 = vrot.slane %v177_v24, %v5377_v8  ;;  %v5524_v45 = vcombine.high %v5512_v27, %v5512_v27 }
  0x2d   :  { %v927_v42 = vcombine.low %v918_v16, %v925_v23  ;;  %v5527_v46 = vrot.slane %v200_v29, %v5377_v8  ;;  %v551_v47 = vsel %vm5450_vm14, %v544_v22, %v549_v31  ;;  %v558_v48 = vshll.u32 %v5492_v10, 16 }
  0x2e   :  { %v561_v49 = vshrl.u32 %v5492_v10, 16  ;;  %v566_v50 = vshll.u32 %v5500_v14, 16  ;;  %v450_v52 = vcombine.high %v5520_v43, %v5520_v43  ;;  %v569_v53 = vshrl.u32 %v5500_v14, 16 }
  0x2f   :  { %v941_v51 = vrot.slane %v927_v42, %v5377_v8  ;;  %v574_v54 = vshll.u32 %v449_v21, 16  ;;  %v560_v57 = vsel %vm5450_vm14, %v553_v34, %v558_v48  ;;  %v578_v59 = vshrl.u32 %v5512_v27, 16 }
  0x30   :  { %v568_v58 = vsel %vm5450_vm14, %v561_v49, %v566_v50  ;;  %v583_v60 = vshll.u32 %v5520_v43, 16  ;;  %v586_v63 = vshrl.u32 %v5520_v43, 16  ;;  %v591_v0 = vshll.u32 %v5524_v45, 16 }
  0x31   :  { %v942_v61 = vcombine.low %v934_v25, %v941_v51  ;;  %v576_v62 = vsel %vm5450_vm14, %v569_v53, %v574_v54  ;;  %v594_v2 = vshrl.u32 %v5524_v45, 16  ;;  %v599_v3 = vshll.u32 %v450_v52, 16 }
  0x32   :  { %v585_v1 = vsel %vm5450_vm14, %v578_v59, %v583_v60  ;;  %v603_v5 = vshrl.u32 %v5516_v26, 16  ;;  %v593_v6 = vsel %vm5450_vm14, %v586_v63, %v591_v0  ;;  %v608_v7 = vshll.u32 %v5527_v46, 16 }
  0x33   :  { %5036 = vmatprep.mubr.msk.bf16.mxu0 %vm1212_vm15, %v942_v61  ;;  %v943_v11 = vcombine.low %v551_v47, %v560_v57  ;;  %v944_v12 = vcombine.low %v568_v58, %v576_v62  ;;  %v601_v13 = vsel %vm5450_vm14, %v594_v2, %v599_v3  ;;  %v945_v15 = vcombine.low %v585_v1, %v593_v6  ;;  %v5199_v3 = vld [vmem:[#allocation2 + $0x8] sm:$0xff]  }
  0x34   :  { %v52_v16 = vpack.c.bf16 %v36_v55, %v36_v55  ;;  %v53_v17 = vpack.c.bf16 %v37_v56, %v37_v56  ;;  %v610_v18 = vsel %vm5450_vm14, %v603_v5, %v608_v7  ;;  %v5570_v21 = vcombine.high %v5516_v26, %v5516_v26 }
  0x35   :  { %v953_v19 = vrot.slane %v943_v11, %v5377_v8  ;;  %v960_v20 = vrot.slane %v944_v12, %v5377_v8  ;;  %v946_v22 = vcombine.low %v601_v13, %v610_v18  ;;  %v967_v23 = vrot.slane %v945_v15, %v5377_v8  ;;  %v39_v18 = vld [vmem:[%s6863_s0 + $0x48] sm:$0x7f] }
  0x36   :  { %v222_v24 = vrot.slane %v52_v16, %v5377_v8  ;;  %v245_v29 = vrot.slane %v53_v17, %v5377_v8  ;;  %v451_v31 = vcombine.high %v5527_v46, %v5527_v46  ;;  %v611_v34 = vshrl.u32 %v5527_v46, 16  ;;  %v38_v17 = vld [vmem:[%s6863_s0 + $0x40] sm:$0x7f] }
  0x37   :  { %v975_v25 = vcombine.low %v953_v19, %v960_v20  ;;  %v616_v42 = vshll.u32 %v5570_v21, 16  ;;  %v974_v47 = vrot.slane %v946_v22, %v5377_v8  ;;  %v619_v54 = vshrl.u32 %v5570_v21, 16 }
  0x38   :  { %v223_v48 = vcombine.high %v222_v24, %v222_v24  ;;  %v5581_v49 = vrot.slane %v222_v24, %v5377_v8  ;;  %v246_v50 = vcombine.high %v245_v29, %v245_v29  ;;  %v5585_v52 = vrot.slane %v245_v29, %v5377_v8  ;;  %v40_v24 = vld [vmem:[%s6863_s0 + $0x50] sm:$0x7f] }
  0x39   :  { %v983_v51 = vrot.slane %v975_v25, %v5377_v8  ;;  %v618_v53 = vsel %vm5450_vm14, %v611_v34, %v616_v42  ;;  %v976_v55 = vcombine.low %v967_v23, %v974_v47  ;;  %v624_v60 = vshll.u32 %v451_v31, 16 }
  0x3a   :  { %v5591_v56 = vrot.slane %v223_v48, %v5377_v8  ;;  %v5595_v57 = vcombine.high %v5581_v49, %v5581_v49  ;;  %v5598_v58 = vrot.slane %v246_v50, %v5377_v8  ;;  %v5602_v59 = vcombine.high %v5585_v52, %v5585_v52 }
  0x3b   :  { %v628_v61 = vshrl.u32 %v5581_v49, 16  ;;  %v653_v62 = vshrl.u32 %v5585_v52, 16  ;;  %v990_v63 = vrot.slane %v976_v55, %v5377_v8  ;;  %v626_v5 = vsel %vm5450_vm14, %v619_v54, %v624_v60  ;;  %v5650_v54 = vld [vmem:[%s6863_s0 + $0x60] sm:$0x7f] }
  0x3c   :  { %v452_v0 = vcombine.high %v5591_v56, %v5591_v56  ;;  %v453_v1 = vcombine.high %v5598_v58, %v5598_v58  ;;  %v633_v2 = vshll.u32 %v5591_v56, 16  ;;  %v636_v6 = vshrl.u32 %v5591_v56, 16 }
  0x3d   :  { %v641_v7 = vshll.u32 %v5595_v57, 16  ;;  %v644_v11 = vshrl.u32 %v5595_v57, 16  ;;  %v991_v12 = vcombine.low %v983_v51, %v990_v63  ;;  %v658_v16 = vshll.u32 %v5598_v58, 16  ;;  %v5645_v51 = vld [vmem:[%s6863_s0 + $0x58] sm:$0x7f] }
  0x3e   :  { %v635_v13 = vsel %vm5450_vm14, %v628_v61, %v633_v2  ;;  %v649_v15 = vshll.u32 %v452_v0, 16  ;;  %v661_v20 = vshrl.u32 %v5598_v58, 16  ;;  %v666_v22 = vshll.u32 %v5602_v59, 16  ;;  %v5200_v61 = vld [vmem:[#allocation2 + $0x10] sm:$0xff]  }
  0x3f   :  { %v643_v19 = vsel %vm5450_vm14, %v636_v6, %v641_v7  ;;  %v669_v23 = vshrl.u32 %v5602_v59, 16  ;;  %5037 = vmatmul.mubr.msk.bf16.vlgmr.msra.gmra.mrb[0].mxu0 %vm1212_vm15, %v991_v12  ;;  %v660_v25 = vsel %vm5450_vm14, %v653_v62, %v658_v16  ;;  %v674_v31 = vshll.u32 %v453_v1, 16 }
  0x40   :  { %v651_v29 = vsel %vm5450_vm14, %v644_v11, %v649_v15  ;;  %v992_v34 = vcombine.low %v618_v53, %v626_v5  ;;  %5049 = vmatpush3.bf16.msra.mxu0 %v5456_v44  ;;  %v668_v42 = vsel %vm5450_vm14, %v661_v20, %v666_v22  ;;  %v993_v47 = vcombine.low %v635_v13, %v643_v19  ;;  %v5201_v20 = vld [vmem:[#allocation2 + $0x18] sm:$0xff]  }
  0x41   :  { %v994_v48 = vcombine.low %v651_v29, %v660_v25  ;;  %v54_v50 = vpack.c.bf16 %v38_v17, %v38_v17  ;;  %5050 = vmatprep.subr.bf16.mxu0 %v5199_v3  ;;  %v676_v44 = vsel %vm5450_vm14, %v669_v23, %v674_v31  ;;  %v55_v55 = vpack.c.bf16 %v39_v18, %v39_v18 }
  0x42   :  { %v1002_v53 = vrot.slane %v992_v34, %v5377_v8  ;;  %v56_v60 = vpack.c.bf16 %v40_v24, %v40_v24  ;;  %v995_v62 = vcombine.low %v668_v42, %v676_v44  ;;  %v1009_v63 = vrot.slane %v993_v47, %v5377_v8 }
  0x43   :  { %v1016_v0 = vrot.slane %v994_v48, %v5377_v8  ;;  %v268_v1 = vrot.slane %v54_v50, %v5377_v8  ;;  %v291_v2 = vrot.slane %v55_v55, %v5377_v8  ;;  %v57_v6 = vpack.c.bf16 %v5645_v51, %v5645_v51 }
  0x44   :  { %v314_v5 = vrot.slane %v56_v60, %v5377_v8  ;;  %v58_v7 = vpack.c.bf16 %v5650_v54, %v5650_v54  ;;  %5051 = vmatpush3.bf16.msra.mxu0 %v5199_v3  ;;  %v1023_v11 = vrot.slane %v995_v62, %v5377_v8  ;;  %v1024_v12 = vcombine.low %v1002_v53, %v1009_v63 }
  0x45   :  { %v269_v13 = vcombine.high %v268_v1, %v268_v1  ;;  %v5666_v15 = vrot.slane %v268_v1, %v5377_v8  ;;  %v292_v16 = vcombine.high %v291_v2, %v291_v2  ;;  %v5669_v17 = vrot.slane %v291_v2, %v5377_v8  ;;  %5052 = vmatprep.subr.bf16.mxu0 %v5200_v61 }
  0x46   :  { %v315_v18 = vcombine.high %v314_v5, %v314_v5  ;;  %v5672_v19 = vrot.slane %v314_v5, %v5377_v8  ;;  %v1025_v22 = vcombine.low %v1016_v0, %v1023_v11  ;;  %v1032_v3 = vrot.slane %v1024_v12, %v5377_v8 }
  0x47   :  { %v5676_v23 = vrot.slane %v269_v13, %v5377_v8  ;;  %v5680_v24 = vcombine.high %v5666_v15, %v5666_v15  ;;  %v5683_v29 = vrot.slane %v292_v16, %v5377_v8  ;;  %v5687_v25 = vcombine.high %v5669_v17, %v5669_v17  ;;  %v43_v16 = vld [vmem:[%s6863_s0 + $0x68] sm:$0x7f] }
  0x48   :  { %v5690_v31 = vrot.slane %v315_v18, %v5377_v8  ;;  %v5694_v34 = vcombine.high %v5672_v19, %v5672_v19  ;;  %v1039_v42 = vrot.slane %v1025_v22, %v5377_v8  ;;  %v678_v48 = vshrl.u32 %v5666_v15, 16  ;;  %5053 = vmatpush3.bf16.msra.mxu0 %v5200_v61 }
  0x49   :  { %v454_v47 = vcombine.high %v5676_v23, %v5676_v23  ;;  %v683_v50 = vshll.u32 %v5676_v23, 16  ;;  %v455_v51 = vcombine.high %v5683_v29, %v5683_v29  ;;  %v686_v54 = vshrl.u32 %v5676_v23, 16  ;;  %5054 = vmatprep.subr.bf16.mxu0 %v5201_v20 }
  0x4a   :  { %v691_v44 = vshll.u32 %v5680_v24, 16  ;;  %v694_v53 = vshrl.u32 %v5680_v24, 16  ;;  %v1040_v55 = vcombine.low %v1032_v3, %v1039_v42  ;;  %v703_v63 = vshrl.u32 %v5669_v17, 16 }
  0x4b   :  { %v685_v60 = vsel %vm5450_vm14, %v678_v48, %v683_v50  ;;  %v699_v62 = vshll.u32 %v454_v47, 16  ;;  %v708_v0 = vshll.u32 %v5683_v29, 16  ;;  %v711_v1 = vshrl.u32 %v5683_v29, 16 }
  0x4c   :  { %v693_v61 = vsel %vm5450_vm14, %v686_v54, %v691_v44  ;;  %v716_v2 = vshll.u32 %v5687_v25, 16  ;;  %5040 = vmatprep.mubr.msk.bf16.mxu0 %vm1212_vm15, %v1040_v55  ;;  %v719_v11 = vshrl.u32 %v5687_v25, 16  ;;  %v724_v12 = vshll.u32 %v455_v51, 16  ;;  %5055 = vmatpush3.bf16.msra.mxu0 %v5201_v20 }
  0x4d   :  { %v701_v5 = vsel %vm5450_vm14, %v694_v53, %v699_v62  ;;  %v728_v13 = vshrl.u32 %v5672_v19, 16  ;;  %v710_v18 = vsel %vm5450_vm14, %v703_v63, %v708_v0  ;;  %v733_v3 = vshll.u32 %v5690_v31, 16 }
  0x4e   :  { %v718_v22 = vsel %vm5450_vm14, %v711_v1, %v716_v2  ;;  %v736_v42 = vshrl.u32 %v5690_v31, 16  ;;  %v726_v47 = vsel %vm5450_vm14, %v719_v11, %v724_v12  ;;  %v741_v48 = vshll.u32 %v5694_v34, 16 }
  0x4f   :  { %v1041_v50 = vcombine.low %v685_v60, %v693_v61  ;;  %v1042_v51 = vcombine.low %v701_v5, %v710_v18  ;;  %v735_v20 = vsel %vm5450_vm14, %v728_v13, %v733_v3  ;;  %v1043_v54 = vcombine.low %v718_v22, %v726_v47 }
  0x50   :  { %v59_v44 = vpack.c.bf16 %v43_v16, %v43_v16  ;;  %v337_v53 = vrot.slane %v57_v6, %v5377_v8  ;;  %v743_v55 = vsel %vm5450_vm14, %v736_v42, %v741_v48  ;;  %v360_v0 = vrot.slane %v58_v7, %v5377_v8 }
  0x51   :  { %v1051_v62 = vrot.slane %v1041_v50, %v5377_v8  ;;  %v1058_v63 = vrot.slane %v1042_v51, %v5377_v8  ;;  %v1044_v1 = vcombine.low %v735_v20, %v743_v55  ;;  %v1065_v60 = vrot.slane %v1043_v54, %v5377_v8 }
  0x52   :  { %v338_v61 = vcombine.high %v337_v53, %v337_v53  ;;  %v5741_v2 = vrot.slane %v337_v53, %v5377_v8  ;;  %v361_v11 = vcombine.high %v360_v0, %v360_v0  ;;  %v5744_v6 = vrot.slane %v360_v0, %v5377_v8 }
  0x53   :  { %v1073_v5 = vcombine.low %v1051_v62, %v1058_v63  ;;  %v383_v12 = vrot.slane %v59_v44, %v5377_v8  ;;  %v1072_v13 = vrot.slane %v1044_v1, %v5377_v8  ;;  %v456_v18 = vcombine.high %v5690_v31, %v5690_v31 }
  0x54   :  { %6882 = vst [vmem:[#allocation9_spill] sm:$0xff] %v5744_v6  ;;  %v5749_v16 = vrot.slane %v338_v61, %v5377_v8  ;;  %v5753_v7 = vcombine.high %v5741_v2, %v5741_v2  ;;  %v5759_v3 = vrot.slane %v361_v11, %v5377_v8  ;;  %v5763_v42 = vcombine.high %v5744_v6, %v5744_v6 }
  0x55   :  { %v1081_v22 = vrot.slane %v1073_v5, %v5377_v8  ;;  %v384_v47 = vcombine.high %v383_v12, %v383_v12  ;;  %v1074_v48 = vcombine.low %v1065_v60, %v1072_v13  ;;  %v5766_v50 = vrot.slane %v383_v12, %v5377_v8 }
  0x56   :  { %6883 = vst [vmem:[#allocation10_spill] sm:$0xff] %v5749_v16  ;;  %6884 = vst [vmem:[#allocation11_spill] sm:$0xff] %v5759_v3  ;;  %v457_v51 = vcombine.high %v5749_v16, %v5749_v16  ;;  %v744_v20 = vshrl.u32 %v5694_v34, 16  ;;  %v458_v44 = vcombine.high %v5759_v3, %v5759_v3  ;;  %v749_v53 = vshll.u32 %v456_v18, 16 }
  0x57   :  { %6885 = vst [vmem:[#allocation12_spill] sm:$0xff] %v5763_v42  ;;  %v5772_v54 = vrot.slane %v384_v47, %v5377_v8  ;;  %v753_v55 = vshrl.u32 %v5741_v2, 16  ;;  %v1088_v62 = vrot.slane %v1074_v48, %v5377_v8  ;;  %v758_v63 = vshll.u32 %v5749_v16, 16  ;;  %v44_v48 = vld [vmem:[%s6863_s0 + $0x70] sm:$0x7f] }
  0x58   :  { %v761_v0 = vshrl.u32 %v5749_v16, 16  ;;  %v766_v1 = vshll.u32 %v5753_v7, 16  ;;  %v751_v60 = vsel %vm5450_vm14, %v744_v20, %v749_v53  ;;  %v769_v61 = vshrl.u32 %v5753_v7, 16 }
  0x59   :  { %v774_v5 = vshll.u32 %v457_v51, 16  ;;  %v778_v11 = vshrl.u32 %v5744_v6, 16  ;;  %v1089_v12 = vcombine.low %v1081_v22, %v1088_v62  ;;  %v760_v13 = vsel %vm5450_vm14, %v753_v55, %v758_v63  ;;  %v45_v55 = vld [vmem:[%s6863_s0 + $0x78] sm:$0x7f] }
  0x5a   :  { %v768_v18 = vsel %vm5450_vm14, %v761_v0, %v766_v1  ;;  %v783_v47 = vshll.u32 %v5759_v3, 16  ;;  %v786_v51 = vshrl.u32 %v5759_v3, 16  ;;  %v791_v53 = vshll.u32 %v5763_v42, 16 }
  0x5b   :  { %v776_v20 = vsel %vm5450_vm14, %v769_v61, %v774_v5  ;;  %v794_v22 = vshrl.u32 %v5763_v42, 16  ;;  %5041 = vmatmul.mubr.msk.bf16.gmra.mrb[4].mxu0 %vm1212_vm15, %v1089_v12  ;;  %v799_v63 = vshll.u32 %v458_v44, 16  ;;  %v803_v0 = vshrl.u32 %v5766_v50, 16 }
  0x5c   :  { %v785_v62 = vsel %vm5450_vm14, %v778_v11, %v783_v47  ;;  %v808_v1 = vshll.u32 %v5772_v54, 16  ;;  %v793_v61 = vsel %vm5450_vm14, %v786_v51, %v791_v53  ;;  %v1090_v5 = vcombine.low %v751_v60, %v760_v13 }
  0x5d   :  { %v1091_v9 = vcombine.low %v768_v18, %v776_v20  ;;  %v60_v4 = vpack.c.bf16 %v44_v48, %v44_v48  ;;  %v801_v42 = vsel %vm5450_vm14, %v794_v22, %v799_v63  ;;  %v1092_v6 = vcombine.low %v785_v62, %v793_v61 }
  0x5e   :  { %v810_v12 = vsel %vm5450_vm14, %v803_v0, %v808_v1  ;;  %v61_v3 = vpack.c.bf16 %v45_v55, %v45_v55  ;;  %v1100_v44 = vrot.slane %v1090_v5, %v5377_v8  ;;  %v5816_v16 = vcombine.high %v5766_v50, %v5766_v50 }
  0x5f   :  { %v1093_v11 = vcombine.low %v801_v42, %v810_v12  ;;  %v1107_v47 = vrot.slane %v1091_v9, %v5377_v8  ;;  %v1114_v60 = vrot.slane %v1092_v6, %v5377_v8  ;;  %v406_v13 = vrot.slane %v60_v4, %v5377_v8 }
  0x60   :  { %v429_v18 = vrot.slane %v61_v3, %v5377_v8  ;;  %v459_v48 = vcombine.high %v5772_v54, %v5772_v54  ;;  %v811_v51 = vshrl.u32 %v5772_v54, 16  ;;  %v816_v9 = vshll.u32 %v5816_v16, 16 }
  0x61   :  { %v1121_v20 = vrot.slane %v1093_v11, %v5377_v8  ;;  %v1122_v42 = vcombine.low %v1100_v44, %v1107_v47  ;;  %v407_v53 = vcombine.high %v406_v13, %v406_v13  ;;  %v5827_v22 = vrot.slane %v406_v13, %v5377_v8 }
  0x62   :  { %v430_v55 = vcombine.high %v429_v18, %v429_v18  ;;  %v5830_v6 = vrot.slane %v429_v18, %v5377_v8  ;;  %v818_v62 = vsel %vm5450_vm14, %v811_v51, %v816_v9  ;;  %v819_v63 = vshrl.u32 %v5816_v16, 16 }
  0x63   :  { %v1123_v4 = vcombine.low %v1114_v60, %v1121_v20  ;;  %v1130_v3 = vrot.slane %v1122_v42, %v5377_v8  ;;  %v5837_v0 = vrot.slane %v407_v53, %v5377_v8  ;;  %v5841_v1 = vcombine.high %v5827_v22, %v5827_v22 }
  0x64   :  { %6886 = vst [vmem:[#allocation13_spill] sm:$0xff] %v5830_v6  ;;  %v5844_v61 = vrot.slane %v430_v55, %v5377_v8  ;;  %v5848_v5 = vcombine.high %v5830_v6, %v5830_v6  ;;  %v824_v11 = vshll.u32 %v459_v48, 16  ;;  %v828_v44 = vshrl.u32 %v5827_v22, 16 }
  0x65   :  { %6887 = vst [vmem:[#allocation14_spill] sm:$0xff] %v5841_v1  ;;  %v1137_v12 = vrot.slane %v1123_v4, %v5377_v8  ;;  %v853_v47 = vshrl.u32 %v5830_v6, 16  ;;  %v460_v60 = vcombine.high %v5837_v0, %v5837_v0  ;;  %v833_v18 = vshll.u32 %v5837_v0, 16 }
  0x66   :  { %6888 = vst [vmem:[#allocation15_spill] sm:$0xff] %v5844_v61  ;;  %6889 = vst [vmem:[#allocation16_spill] sm:$0xff] %v5848_v5  ;;  %v461_v13 = vcombine.high %v5844_v61, %v5844_v61  ;;  %v836_v20 = vshrl.u32 %v5837_v0, 16  ;;  %v826_v51 = vsel %vm5450_vm14, %v819_v63, %v824_v11  ;;  %v841_v48 = vshll.u32 %v5841_v1, 16 }
  0x67   :  { %v1138_v42 = vcombine.low %v1130_v3, %v1137_v12  ;;  %v844_v9 = vshrl.u32 %v5841_v1, 16  ;;  %v835_v53 = vsel %vm5450_vm14, %v828_v44, %v833_v18  ;;  %v849_v55 = vshll.u32 %v460_v60, 16 }
  0x68   :  { %v858_v4 = vshll.u32 %v5844_v61, 16  ;;  %v861_v6 = vshrl.u32 %v5844_v61, 16  ;;  %v843_v3 = vsel %vm5450_vm14, %v836_v20, %v841_v48  ;;  %v866_v12 = vshll.u32 %v5848_v5, 16 }
  0x69   :  { %5044 = vmatprep.mubr.msk.bf16.mxu0 %vm1212_vm15, %v1138_v42  ;;  %v869_v63 = vshrl.u32 %v5848_v5, 16  ;;  %v874_v11 = vshll.u32 %v461_v13, 16  ;;  %v851_v1 = vsel %vm5450_vm14, %v844_v9, %v849_v55  ;;  %v1139_v60 = vcombine.low %v818_v62, %v826_v51 }
  0x6a   :  { %v860_v44 = vsel %vm5450_vm14, %v853_v47, %v858_v4  ;;  %v1140_v18 = vcombine.low %v835_v53, %v843_v3  ;;  %v868_v61 = vsel %vm5450_vm14, %v861_v6, %v866_v12  ;;  %v1312_v48 = vcombine.low %v5414_v28, %v5429_v35 }
  0x6b   :  { %v876_v42 = vsel %vm5450_vm14, %v869_v63, %v874_v11  ;;  %v1141_v20 = vcombine.low %v851_v1, %v860_v44  ;;  %v1149_v13 = vrot.slane %v1139_v60, %v5377_v8  ;;  %v1313_v47 = vcombine.low %v5433_v36, %v5417_v30 }
  0x6c   :  { %v1142_v5 = vcombine.low %v868_v61, %v876_v42  ;;  %v1156_v9 = vrot.slane %v1140_v18, %v5377_v8  ;;  %v1314_v6 = vcombine.low %v5436_v37, %v5440_v38  ;;  %v1315_v41 = vcombine.low %v5423_v32, %v5443_v39 }
  0x6d   :  { %v1163_v62 = vrot.slane %v1141_v20, %v5377_v8  ;;  %v1322_v1 = vrot.slane %v1312_v48, %v5377_v8  ;;  %v1329_v61 = vrot.slane %v1313_v47, %v5377_v8  ;;  %v1362_v51 = vcombine.low %v5492_v10, %v5500_v14 }
  0x6e   :  { %v1170_v28 = vrot.slane %v1142_v5, %v5377_v8  ;;  %v1171_v35 = vcombine.low %v1149_v13, %v1156_v9  ;;  %v1336_v30 = vrot.slane %v1314_v6, %v5377_v8  ;;  %v1343_v36 = vrot.slane %v1315_v41, %v5377_v8  ;;  %v6893_v6 = vld [vmem:[#allocation9_spill] sm:$0xff] }
  0x6f   :  { %v1363_v37 = vcombine.low %v5512_v27, %v5520_v43  ;;  %v1364_v32 = vcombine.low %v5524_v45, %v5516_v26  ;;  %v1344_v5 = vcombine.low %v1322_v1, %v1329_v61  ;;  %v6890_v53 = vcombine.low %v5447_v40, %v5426_v33 }
  0x70   :  { %v1172_v38 = vcombine.low %v1163_v62, %v1170_v28  ;;  %v1179_v39 = vrot.slane %v1171_v35, %v5377_v8  ;;  %v1345_v10 = vcombine.low %v1336_v30, %v1343_v36  ;;  %v1378_v14 = vrot.slane %v1362_v51, %v5377_v8  ;;  %v6891_v62 = vld [vmem:[#allocation10_spill] sm:$0xff] }
  0x71   :  { %v1371_v55 = vrot.slane %v6890_v53, %v5377_v8  ;;  %v1385_v4 = vrot.slane %v1363_v37, %v5377_v8  ;;  %v1392_v3 = vrot.slane %v1364_v32, %v5377_v8  ;;  %v1352_v26 = vrot.slane %v1344_v5, %v5377_v8  ;;  %v6897_v5 = vld [vmem:[#allocation16_spill] sm:$0xff]  ;;  %v6898_v53 = vld [vmem:[#allocation15_spill] sm:$0xff] }
  0x72   :  { %v1186_v27 = vrot.slane %v1172_v38, %v5377_v8  ;;  %v1410_v43 = vcombine.low %v5527_v46, %v5570_v21  ;;  %v1411_v45 = vcombine.low %v5581_v49, %v5591_v56  ;;  %v1359_v33 = vrot.slane %v1345_v10, %v5377_v8  ;;  %v6896_v38 = vld [vmem:[#allocation14_spill] sm:$0xff] }
  0x73   :  { %v1393_v40 = vcombine.low %v1371_v55, %v1378_v14  ;;  %v1394_v12 = vcombine.low %v1385_v4, %v1392_v3  ;;  %v1412_v63 = vcombine.low %v5595_v57, %v5585_v52  ;;  %v1413_v44 = vcombine.low %v5598_v58, %v5602_v59 }
  0x74   :  { %v1187_v11 = vcombine.low %v1179_v39, %v1186_v27  ;;  %v1420_v60 = vrot.slane %v1410_v43, %v5377_v8  ;;  %v1427_v18 = vrot.slane %v1411_v45, %v5377_v8  ;;  %v1360_v42 = vcombine.low %v1352_v26, %v1359_v33 }
  0x75   :  { %v1401_v46 = vrot.slane %v1393_v40, %v5377_v8  ;;  %v1408_v21 = vrot.slane %v1394_v12, %v5377_v8  ;;  %v1434_v49 = vrot.slane %v1412_v63, %v5377_v8  ;;  %v1441_v56 = vrot.slane %v1413_v44, %v5377_v8  ;;  %v6899_v63 = vld [vmem:[#allocation8_spill] sm:$0xff]  ;;  %v1729_v44 = vld [vmem:[%s6865_s2] sm:$0x3] }
  0x76   :  { %5045 = vmatmul.mubr.msk.bf16.gmra.mrb[8].mxu0 %vm1212_vm15, %v1187_v11  ;;  %v1442_v52 = vcombine.low %v1420_v60, %v1427_v18  ;;  %v1459_v57 = vcombine.low %v5666_v15, %v5676_v23  ;;  %v1460_v58 = vcombine.low %v5680_v24, %v5669_v17  ;;  %v1461_v20 = vcombine.low %v5683_v29, %v5687_v25  ;;  %v6892_v25 = vld [vmem:[#allocation11_spill] sm:$0xff] }
  0x77   :  { %5056 = vmatprep.mubr.msk.bf16.mxu0 %vm1212_vm15, %v1360_v42  ;;  %v1409_v59 = vcombine.low %v1401_v46, %v1408_v21  ;;  %v1462_v48 = vcombine.low %v5672_v19, %v5690_v31  ;;  %v1508_v13 = vcombine.low %v5694_v34, %v5741_v2  ;;  %v1443_v9 = vcombine.low %v1434_v49, %v1441_v56  ;;  %v6894_v2 = vld [vmem:[#allocation12_spill] sm:$0xff] }
  0x78   :  { %v1450_v47 = vrot.slane %v1442_v52, %v5377_v8  ;;  %v1469_v15 = vrot.slane %v1459_v57, %v5377_v8  ;;  %v1476_v23 = vrot.slane %v1460_v58, %v5377_v8  ;;  %v1483_v17 = vrot.slane %v1461_v20, %v5377_v8 }
  0x79   :  { %v1490_v24 = vrot.slane %v1462_v48, %v5377_v8  ;;  %v1509_v29 = vcombine.low %v6891_v62, %v5753_v7  ;;  %v1510_v19 = vcombine.low %v6893_v6, %v6892_v25  ;;  %v1457_v31 = vrot.slane %v1443_v9, %v5377_v8 }
  0x7a   :  { %v1491_v34 = vcombine.low %v1469_v15, %v1476_v23  ;;  %v1511_v41 = vcombine.low %v6894_v2, %v5766_v50  ;;  %v1518_v1 = vrot.slane %v1508_v13, %v5377_v8  ;;  %v1557_v51 = vcombine.low %v5772_v54, %v5816_v16  ;;  %v6895_v50 = vld [vmem:[#allocation13_spill] sm:$0xff] }
  0x7b   :  { %v1492_v28 = vcombine.low %v1483_v17, %v1490_v24  ;;  %v1525_v35 = vrot.slane %v1509_v29, %v5377_v8  ;;  %v1532_v61 = vrot.slane %v1510_v19, %v5377_v8  ;;  %v1458_v7 = vcombine.low %v1450_v47, %v1457_v31 }
  0x7c   :  { %v1539_v30 = vrot.slane %v1511_v41, %v5377_v8  ;;  %v1558_v36 = vcombine.low %v5827_v22, %v5837_v0  ;;  %v1499_v37 = vrot.slane %v1491_v34, %v5377_v8  ;;  %v1559_v39 = vcombine.low %v6896_v38, %v6895_v50 }
  0x7d   :  { %v1540_v32 = vcombine.low %v1518_v1, %v1525_v35  ;;  %v1560_v55 = vcombine.low %v6898_v53, %v6897_v5  ;;  %v1506_v10 = vrot.slane %v1492_v28, %v5377_v8  ;;  %v1567_v54 = vrot.slane %v1557_v51, %v5377_v8 }
  0x7e   :  { %5057 = vmatmul.mubr.msk.bf16.vlgmr.msra.gmra.mrb[0].mxu0 %vm1212_vm15, %v1409_v59  ;;  %v1541_v16 = vcombine.low %v1532_v61, %v1539_v30  ;;  %v1574_v14 = vrot.slane %v1558_v36, %v5377_v8  ;;  %v1581_v0 = vrot.slane %v1559_v39, %v5377_v8  ;;  %v5979_v11 = vsub.s32 1, %v6899_v63 }
  0x7f   :  { %5060 = vmatprep.mubr.msk.bf16.mxu0 %vm1212_vm15, %v1458_v7  ;;  %v1548_v22 = vrot.slane %v1540_v32, %v5377_v8  ;;  %v1588_v4 = vrot.slane %v1560_v55, %v5377_v8  ;;  %v1507_v27 = vcombine.low %v1499_v37, %v1506_v10  ;;  %v5990_v18 = vsub.s32 0, %v6899_v63  ;;  %v5202_v55 = vld [vmem:[#allocation2 + $0x60] sm:$0xff]  }
  0x80   :  { %v1555_v3 = vrot.slane %v1541_v16, %v5377_v8  ;;  %v1589_v26 = vcombine.low %v1567_v54, %v1574_v14  ;;  %v5985_v60 = vrot.slane %v1729_v44, %v5979_v11  ;;  %5068 = vmatprep.subr.bf16.mxu1 %v5202_v55  ;;  %vm4783_vm8 = vcmask 516096  }
  0x81   :  { %v1590_v43 = vcombine.low %v1581_v0, %v1588_v4  ;;  %v1733_v42 = vrot.slane %v1729_v44, %v5990_v18  ;;  %5069 = vmatpush3.bf16.msra.mxu1 %v5202_v55 }
  0x82   :  { %v1556_v45 = vcombine.low %v1548_v22, %v1555_v3  ;;  %v1597_v33 = vrot.slane %v1589_v26, %v5377_v8  ;;  %1859 = vrot.lane.b32.xlu0 %v5985_v60, %s5331_s22 }
  0x83   :  { %v1604_v40 = vrot.slane %v1590_v43, %v5377_v8 }
  0x85   :  { %v1605_v12 = vcombine.low %v1597_v33, %v1604_v40  ;;  %v5203_v40 = vld [vmem:[#allocation2 + $0x68] sm:$0xff]  }
  0x86   :  { %5061 = vmatmul.mubr.msk.bf16.gmra.mrb[4].mxu0 %vm1212_vm15, %v1507_v27  ;;  %5070 = vmatprep.subr.bf16.mxu1 %v5203_v40 }
  0x87   :  { %5064 = vmatprep.mubr.msk.bf16.mxu0 %vm1212_vm15, %v1556_v45  ;;  %5071 = vmatpush3.bf16.msra.mxu1 %v5203_v40 }
  0x8e   :  { %5065 = vmatmul.mubr.msk.bf16.gmra.mrb[8].mxu0 %vm1212_vm15, %v1605_v12 }
 0x151   :  { %v5058_v46 = vpop.f32.mrb[0].mxu0 }
 0x152   :  { %v1736_v21 = vadd.f32 %v5058_v46, %v1733_v42  ;;  %v1682_v49 = vpop.f32.mrb[1].mxu0 }
 0x153   :  { %v1734_v56 = vadd.f32 %v1733_v42, %v1682_v49  ;;  %v5059_v52 = vpop.f32.mrb[2].mxu0 }
 0x154   :  { %5226 = vtanh.f32 %v1736_v21  ;;  %v1737_v57 = vadd.f32 %v5059_v52, %v1733_v42  ;;  %v1685_v58 = vpop.f32.mrb[3].mxu0  ;;  %v5205_v52 = vld [vmem:[#allocation2 + $0x78] sm:$0xff]  }
 0x155   :  { %5228 = vtanh.f32 %v1734_v56  ;;  %v1735_v59 = vadd.f32 %v1733_v42, %v1685_v58  ;;  %v5204_v56 = vld [vmem:[#allocation2 + $0x70] sm:$0xff]   ;;  %v6044_v58 = vpop.permute.xlu0 %1859 }
 0x156   :  { %5230 = vtanh.f32 %v1737_v57  ;;  %5072 = vmatprep.subr.bf16.mxu1 %v5204_v56  ;;  %v6041_v57 = vld [vmem:[#allocation2 + $0x40] sm:$0xff]  }
 0x157   :  { %5232 = vtanh.f32 %v1735_v59  ;;  %5073 = vmatpush3.bf16.msra.mxu1 %v5204_v56 }
 0x158   :  { %5074 = vmatprep.subr.bf16.mxu1 %v5205_v52 }
 0x159   :  { %v5062_v20 = vpop.f32.mrb[4].mxu0 }
 0x15a   :  { %v1740_v48 = vadd.f32 %v5062_v20, %v1733_v42  ;;  %v1698_v13 = vpop.f32.mrb[5].mxu0 }
 0x15b   :  { %v1738_v9 = vadd.f32 %v1733_v42, %v1698_v13  ;;  %v5063_v47 = vpop.f32.mrb[6].mxu0  ;;  %5075 = vmatpush3.bf16.msra.mxu1 %v5205_v52 }
 0x15c   :  { %v1741_v15 = vadd.f32 %v5063_v47, %v1733_v42  ;;  %v1701_v23 = vpop.f32.mrb[7].mxu0  ;;  %5084 = vmatprep.subr.bf16.mxu1 %v6041_v57 }
 0x15d   :  { %5234 = vtanh.f32 %v1738_v9  ;;  %v1739_v17 = vadd.f32 %v1733_v42, %v1701_v23  ;;  %v5334_v9 = vmov 1983009808  }
 0x15e   :  { %v5993_v24 = vpop.eup %5226  ;;  %v1888_v47 = vunpack.c.l.s4 %v5334_v9 }
 0x15f   :  { %v5995_v62 = vpop.eup %5228  ;;  %5236 = vtanh.f32 %v1739_v17  ;;  %v1760_v29 = vmul.f32 0.5, %v5993_v24 }
 0x160   :  { %v5998_v25 = vpop.eup %5230  ;;  %5238 = vtanh.f32 %v1741_v15  ;;  %v1758_v34 = vmul.f32 0.5, %v5995_v62 }
 0x161   :  { %v5066_v6 = vpop.f32.mrb[8].mxu0  ;;  %v1772_v19 = vadd.f32 0.5, %v1760_v29  ;;  %v1761_v31 = vmul.f32 0.5, %v5998_v25  ;;  %v6002_v2 = vpop.eup %5232 }
 0x162   :  { %v1744_v41 = vadd.f32 %v5066_v6, %v1733_v42  ;;  %v1714_v1 = vpop.f32.mrb[9].mxu0  ;;  %v1770_v36 = vadd.f32 0.5, %v1758_v34  ;;  %v1759_v37 = vmul.f32 0.5, %v6002_v2  ;;  %v1889_v6 = vunpack.c.0.s8 %v1888_v47 }
 0x163   :  { %v1742_v28 = vadd.f32 %v1733_v42, %v1714_v1  ;;  %1798 = vrot.lane.b32.xlu0 %v1772_v19, %s5331_s22  ;;  %v5067_v35 = vpop.f32.mrb[10].mxu0  ;;  %v1773_v61 = vadd.f32 0.5, %v1761_v31 }
 0x164   :  { %5240 = vtanh.f32 %v1744_v41  ;;  %v1745_v51 = vadd.f32 %v5067_v35, %v1733_v42  ;;  %v1717_v7 = vpop.f32.mrb[11].mxu0  ;;  %v1771_v39 = vadd.f32 0.5, %v1759_v37  ;;  %v6056_v1 = vsub.s32 %v1889_v6, %v6899_v63 }
 0x165   :  { %5242 = vtanh.f32 %v1742_v28  ;;  %v1743_v30 = vadd.f32 %v1733_v42, %v1717_v7  ;;  %1800 = vrot.lane.b32.xlu1 %v1773_v61, %s5331_s22 }
 0x166   :  { %5244 = vtanh.f32 %v1745_v51 }
 0x167   :  { %v6007_v32 = vpop.eup %5234  ;;  %1794 = vrot.lane.b32.xlu0 %v1770_v36, %s5331_s22  ;;  %5246 = vtanh.f32 %v1740_v48 }
 0x168   :  { %v1762_v50 = vmul.f32 0.5, %v6007_v32  ;;  %5248 = vtanh.f32 %v1743_v30 }
 0x169   :  { %v6011_v38 = vpop.eup %5236 }
 0x16a   :  { %v1774_v5 = vadd.f32 0.5, %v1762_v50  ;;  %v1763_v53 = vmul.f32 0.5, %v6011_v38  ;;  %v6014_v10 = vpop.eup %5238 }
 0x16b   :  { %1796 = vrot.lane.b32.xlu0 %v1771_v39, %s5331_s22  ;;  %v1765_v14 = vmul.f32 0.5, %v6014_v10 }
 0x16c   :  { %1802 = vrot.lane.b32.xlu1 %v1774_v5, %s5331_s22  ;;  %v1775_v54 = vadd.f32 0.5, %v1763_v53 }
 0x16d   :  { %v1777_v27 = vadd.f32 0.5, %v1765_v14 }
 0x16e   :  { %v6018_v16 = vpop.eup %5240 }
 0x16f   :  { %v6021_v22 = vpop.eup %5242  ;;  %v1768_v43 = vmul.f32 0.5, %v6018_v16 }
 0x170   :  { %v6023_v0 = vpop.eup %5244  ;;  %1804 = vrot.lane.b32.xlu1 %v1775_v54, %s5331_s22  ;;  %v1766_v4 = vmul.f32 0.5, %v6021_v22 }
 0x171   :  { %v6027_v3 = vpop.eup %5246  ;;  %v1769_v45 = vmul.f32 0.5, %v6023_v0  ;;  %v1780_v12 = vadd.f32 0.5, %v1768_v43 }
 0x172   :  { %v1778_v26 = vadd.f32 0.5, %v1766_v4  ;;  %v6031_v33 = vpop.eup %5248  ;;  %v1764_v42 = vmul.f32 0.5, %v6027_v3 }
 0x173   :  { %v1781_v44 = vadd.f32 0.5, %v1769_v45  ;;  %v1767_v46 = vmul.f32 0.5, %v6031_v33 }
 0x174   :  { %1808 = vrot.lane.b32.xlu1 %v1777_v27, %s5331_s22  ;;  %1810 = vrot.lane.b32.xlu0 %v1778_v26, %s5331_s22  ;;  %v1776_v21 = vadd.f32 0.5, %v1764_v42 }
 0x175   :  { %v1779_v49 = vadd.f32 0.5, %v1767_v46 }
 0x178   :  { %1814 = vrot.lane.b32.xlu1 %v1780_v12, %s5331_s22  ;;  %1816 = vrot.lane.b32.xlu0 %v1781_v44, %s5331_s22 }
 0x17c   :  { %1806 = vrot.lane.b32.xlu1 %v1776_v21, %s5331_s22  ;;  %1812 = vrot.lane.b32.xlu0 %v1779_v49, %s5331_s22 }
 0x1d5   :  { %v1799_v59 = vpop.permute.xlu0 %1798 }
 0x1d6   :  { %v1832_v48 = vmul.f32 %v5993_v24, %v1799_v59 }
 0x1d7   :  { %v1801_v20 = vpop.permute.xlu1 %1800 }
 0x1d8   :  { %v1833_v13 = vmul.f32 %v5998_v25, %v1801_v20  ;;  %v1848_v17 = vmul.f32 %v5985_v60, %v1832_v48 }
 0x1d9   :  { %v1795_v15 = vpop.permute.xlu0 %1794 }
 0x1da   :  { %v1849_v23 = vmul.f32 %v5985_v60, %v1833_v13  ;;  %v1830_v29 = vmul.f32 %v5995_v62, %v1795_v15  ;;  %v1864_v24 = vadd.f32 %v6044_v58, %v1848_v17 }
 0x1dc   :  { %v1865_v34 = vadd.f32 %v6044_v58, %v1849_v23  ;;  %v1846_v25 = vmul.f32 %v5985_v60, %v1830_v29  ;;  %v1920_v7 = vcombine.high %v1864_v24, %v1864_v24 }
 0x1dd   :  { %v1797_v19 = vpop.permute.xlu0 %1796 }
 0x1de   :  { %v1803_v31 = vpop.permute.xlu1 %1802  ;;  %v1831_v28 = vmul.f32 %v6002_v2, %v1797_v19  ;;  %v1937_v61 = vcombine.high %v1865_v34, %v1865_v34  ;;  %v6060_v62 = vrot.slane %v1865_v34, %v6056_v1  ;;  %v1862_v30 = vadd.f32 %v6044_v58, %v1846_v25 }
 0x1df   :  { %v1834_v41 = vmul.f32 %v6007_v32, %v1803_v31  ;;  %v6067_v32 = vrot.slane %v1864_v24, %v6056_v1  ;;  %v1934_v53 = vrot.slane %v1920_v7, %v6056_v1 }
 0x1e0   :  { %v1847_v37 = vmul.f32 %v5985_v60, %v1831_v28  ;;  %v6070_v2 = vrot.slane %v1937_v61, %v6056_v1  ;;  %v6074_v39 = vcombine.high %v6060_v62, %v6060_v62  ;;  %v1886_v55 = vcombine.high %v1862_v30, %v1862_v30 }
 0x1e1   :  { %v1850_v51 = vmul.f32 %v5985_v60, %v1834_v41  ;;  %v1935_v27 = vcombine.high %v6067_v32, %v6067_v32  ;;  %v6085_v26 = vrot.slane %v1862_v30, %v6056_v1 }
 0x1e2   :  { %v1805_v35 = vpop.permute.xlu1 %1804  ;;  %v1863_v54 = vadd.f32 %v6044_v58, %v1847_v37  ;;  %v2282_v45 = vcombine.low %v6074_v39, %v6070_v2  ;;  %v6092_v42 = vrot.slane %v1886_v55, %v6056_v1 }
 0x1e3   :  { %v1835_v36 = vmul.f32 %v6011_v38, %v1805_v35  ;;  %v1866_v5 = vadd.f32 %v6044_v58, %v1850_v51  ;;  %v6096_v49 = vcombine.low %v1935_v27, %v1934_v53  ;;  %v6100_v56 = vcombine.high %v6085_v26, %v6085_v26 }
 0x1e4   :  { %v1903_v46 = vcombine.high %v1863_v54, %v1863_v54  ;;  %v6104_v20 = vrot.slane %v2282_v45, %v6056_v1  ;;  %v1902_v15 = vcombine.high %v6092_v42, %v6092_v42  ;;  %v1910_v6 = vrot.slane %v1863_v54, %v6056_v1 }
 0x1e5   :  { %v1851_v38 = vmul.f32 %v5985_v60, %v1835_v36  ;;  %v1954_v40 = vcombine.high %v1866_v5, %v1866_v5  ;;  %v6107_v48 = vrot.slane %v1866_v5, %v6056_v1  ;;  %v2090_v28 = vcombine.low %v6085_v26, %v6100_v56 }
 0x1e6   :  { %v1809_v63 = vpop.permute.xlu1 %1808  ;;  %v1811_v50 = vpop.permute.xlu0 %1810  ;;  %v6119_v19 = vrot.slane %v1903_v46, %v6056_v1  ;;  %v1918_v36 = vcombine.high %v1910_v6, %v1910_v6  ;;  %v2250_v5 = vcombine.low %v6100_v56, %v6092_v42 }
 0x1e7   :  { %v1837_v14 = vmul.f32 %v6014_v10, %v1809_v63  ;;  %v1838_v4 = vmul.f32 %v6021_v22, %v1811_v50  ;;  %v1867_v10 = vadd.f32 %v6044_v58, %v1851_v38  ;;  %v1936_v22 = vcombine.high %v1934_v53, %v1934_v53 }
 0x1e8   :  { %v6110_v13 = vrot.slane %v1954_v40, %v6056_v1  ;;  %v1969_v35 = vcombine.high %v6107_v48, %v6107_v48  ;;  %v1919_v37 = vcombine.high %v6119_v19, %v6119_v19  ;;  %v6149_v63 = vcombine.low %v1902_v15, %v1910_v6 }
 0x1e9   :  { %v1853_v12 = vmul.f32 %v5985_v60, %v1837_v14  ;;  %v1854_v44 = vmul.f32 %v5985_v60, %v1838_v4  ;;  %v1971_v23 = vcombine.high %v1867_v10, %v1867_v10  ;;  %v6115_v29 = vcombine.low %v1934_v53, %v1936_v22 }
 0x1ea   :  { %v1815_v43 = vpop.permute.xlu1 %1814  ;;  %v1817_v59 = vpop.permute.xlu0 %1816  ;;  %v6136_v61 = vcombine.high %v6110_v13, %v6110_v13  ;;  %v6140_v51 = vrot.slane %v1867_v10, %v6056_v1  ;;  %v2290_v14 = vcombine.low %v6107_v48, %v1969_v35 }
 0x1eb   :  { %v1869_v21 = vadd.f32 %v6044_v58, %v1853_v12  ;;  %v1870_v52 = vadd.f32 %v6044_v58, %v1854_v44  ;;  %v1840_v17 = vmul.f32 %v6018_v16, %v1815_v43  ;;  %v1841_v34 = vmul.f32 %v6023_v0, %v1817_v59 }
 0x1ec   :  { %v6143_v7 = vrot.slane %v1971_v23, %v6056_v1  ;;  %v2298_v40 = vcombine.low %v6136_v61, %v6140_v51 }
 0x1ed   :  { %v2005_v9 = vcombine.high %v1869_v21, %v1869_v21  ;;  %v6122_v31 = vrot.slane %v1869_v21, %v6056_v1  ;;  %v2022_v24 = vcombine.high %v1870_v52, %v1870_v52  ;;  %v1856_v25 = vmul.f32 %v5985_v60, %v1840_v17 }
 0x1ee   :  { %v1807_v47 = vpop.permute.xlu1 %1806  ;;  %v1857_v0 = vmul.f32 %v5985_v60, %v1841_v34  ;;  %v1813_v50 = vpop.permute.xlu0 %1812  ;;  %v1987_v45 = vcombine.high %v6143_v7, %v6143_v7  ;;  %v6173_v12 = vrot.slane %v1870_v52, %v6056_v1  ;;  %v2106_v17 = vcombine.low %v6119_v19, %v1919_v37 }
 0x1ef   :  { %v6126_v41 = vrot.slane %v2005_v9, %v6056_v1  ;;  %v1836_v16 = vmul.f32 %v6027_v3, %v1807_v47  ;;  %v1872_v3 = vadd.f32 %v6044_v58, %v1856_v25  ;;  %v2020_v53 = vcombine.high %v6122_v31, %v6122_v31 }
 0x1f0   :  { %v6160_v38 = vrot.slane %v2022_v24, %v6056_v1  ;;  %v1873_v27 = vadd.f32 %v6044_v58, %v1857_v0  ;;  %v1839_v44 = vmul.f32 %v6031_v33, %v1813_v50  ;;  %v2297_v34 = vrot.slane %v2290_v14, %v6056_v1 }
 0x1f1   :  { %v1852_v30 = vmul.f32 %v5985_v60, %v1836_v16  ;;  %v6157_v55 = vcombine.high %v6126_v41, %v6126_v41  ;;  %v2056_v54 = vcombine.high %v1872_v3, %v1872_v3  ;;  %v6164_v4 = vrot.slane %v1872_v3, %v6056_v1 }
 0x1f2   :  { %v2073_v10 = vcombine.high %v1873_v27, %v1873_v27  ;;  %v2322_v21 = vcombine.low %v6122_v31, %v2020_v53  ;;  %v2038_v59 = vcombine.high %v6160_v38, %v6160_v38  ;;  %v1855_v52 = vmul.f32 %v5985_v60, %v1839_v44 }
 0x1f3   :  { %v1868_v43 = vadd.f32 %v6044_v58, %v1852_v30  ;;  %v6177_v42 = vrot.slane %v2056_v54, %v6056_v1  ;;  %v2330_v9 = vcombine.low %v6157_v55, %v6173_v12  ;;  %v2071_v33 = vcombine.high %v6164_v4, %v6164_v4 }
 0x1f4   :  { %v6191_v47 = vrot.slane %v2073_v10, %v6056_v1  ;;  %v1871_v24 = vadd.f32 %v6044_v58, %v1855_v52  ;;  %v2258_v60 = vcombine.low %v1910_v6, %v1918_v36  ;;  %v2305_v25 = vrot.slane %v2298_v40, %v6056_v1 }
 0x1f5   :  { %v1988_v22 = vcombine.high %v1868_v43, %v1868_v43  ;;  %v6180_v46 = vrot.slane %v1868_v43, %v6056_v1  ;;  %v2306_v16 = vcombine.low %v6143_v7, %v1987_v45  ;;  %v6207_v35 = vcombine.high %v6177_v42, %v6177_v42 }
 0x1f6   :  { %v2089_v0 = vcombine.high %v6191_v47, %v6191_v47  ;;  %v2329_v3 = vrot.slane %v2322_v21, %v6056_v1  ;;  %v2338_v19 = vcombine.low %v6160_v38, %v2038_v59  ;;  %v2039_v58 = vcombine.high %v1871_v24, %v1871_v24 }
 0x1f7   :  { %v6194_v15 = vrot.slane %v1988_v22, %v6056_v1  ;;  %v6198_v23 = vcombine.high %v6180_v46, %v6180_v46  ;;  %v2337_v6 = vrot.slane %v2330_v9, %v6056_v1  ;;  %v2354_v36 = vcombine.low %v6164_v4, %v2071_v33 }
 0x1f8   :  { %v6218_v50 = vrot.slane %v1873_v27, %v6056_v1  ;;  %v2257_v53 = vrot.slane %v2250_v5, %v6056_v1  ;;  %v6223_v14 = vrot.slane %v1871_v24, %v6056_v1  ;;  %v6226_v43 = vrot.slane %v2039_v58, %v6056_v1 }
 0x1f9   :  { %v2314_v30 = vcombine.low %v6198_v23, %v6194_v15  ;;  %v2265_v45 = vrot.slane %v2258_v60, %v6056_v1  ;;  %v2370_v44 = vcombine.low %v6191_v47, %v2089_v0  ;;  %v2266_v27 = vcombine.low %v1919_v37, %v6067_v32 }
 0x1fa   :  { %v2362_v40 = vcombine.low %v6207_v35, %v6218_v50  ;;  %v2313_v10 = vrot.slane %v2306_v16, %v6056_v1  ;;  %v6236_v5 = vcombine.high %v6223_v14, %v6223_v14  ;;  %v2281_v22 = vrot.slane %v6115_v29, %v6056_v1 }
 0x1fb   :  { %v2321_v54 = vrot.slane %v2314_v30, %v6056_v1  ;;  %v4887_v21 = vpack.c.bf16 %v2297_v34, %v6104_v20  ;;  %v2345_v59 = vrot.slane %v2338_v19, %v6056_v1  ;;  %v2273_v9 = vrot.slane %v2266_v27, %v6056_v1 }
 0x1fc   :  { %v4885_v52 = vpack.c.bf16 %v2265_v45, %v2257_v53  ;;  %v4888_v33 = vpack.c.bf16 %v2313_v10, %v2305_v25  ;;  %v2113_v32 = vrot.slane %v2106_v17, %v6056_v1  ;;  %v1986_v37 = vcombine.high %v6140_v51, %v6140_v51  ;;  %v5207_v10 = vld [vmem:[#allocation2 + $0x48] sm:$0xff]  }
 0x1fd   :  { %v4889_v24 = vpack.c.bf16 %v2329_v3, %v2321_v54  ;;  %v2361_v60 = vrot.slane %v2354_v36, %v6056_v1  ;;  %v2346_v16 = vcombine.low %v6236_v5, %v6226_v43  ;;  %v4886_v29 = vpack.c.bf16 %v2281_v22, %v2273_v9 }
 0x1fe   :  { %v2476_v20 = vrot.slane %v4888_v33, %v6056_v1  ;;  %v4890_v34 = vpack.c.bf16 %v2345_v59, %v2337_v6  ;;  %v2369_v19 = vrot.slane %v2362_v40, %v6056_v1  ;;  %v2469_v17 = vrot.slane %v4887_v21, %v6056_v1 }
 0x1ff   :  { %v2486_v0 = vrot.slane %v4889_v24, %v6056_v1  ;;  %v2353_v25 = vrot.slane %v2346_v16, %v6056_v1  ;;  %v2377_v3 = vrot.slane %v2370_v44, %v6056_v1  ;;  %v2004_v51 = vcombine.high %v6194_v15, %v6194_v15 }
 0x200   :  { %v2452_v30 = vrot.slane %v4885_v52, %v6056_v1  ;;  %v2459_v58 = vrot.slane %v4886_v29, %v6056_v1  ;;  %v2493_v36 = vrot.slane %v4890_v34, %v6056_v1  ;;  %v2477_v6 = vcombine.low %v2469_v17, %v2476_v20 }
 0x201   :  { %v4891_v53 = vpack.c.bf16 %v2361_v60, %v2353_v25  ;;  %v2121_v54 = vrot.slane %v6096_v49, %v6056_v1  ;;  %v2105_v45 = vrot.slane %v6149_v63, %v6056_v1  ;;  %v1953_v44 = vcombine.high %v6070_v2, %v6070_v2 }
 0x202   :  { %v2460_v40 = vcombine.low %v2452_v30, %v2459_v58  ;;  %v2494_v27 = vcombine.low %v2486_v0, %v2493_v36  ;;  %v2146_v15 = vcombine.low %v1986_v37, %v6143_v7  ;;  %v4892_v22 = vpack.c.bf16 %v2377_v3, %v2369_v19  ;;  %v5209_v37 = vld [vmem:[#allocation2 + $0x58] sm:$0xff]  }
 0x203   :  { %v2097_v21 = vrot.slane %v2090_v28, %v6056_v1  ;;  %v2037_v49 = vcombine.high %v6173_v12, %v6173_v12  ;;  %v2162_v59 = vcombine.low %v2004_v51, %v6122_v31  ;;  %v4902_v63 = vpack.c.bf16 %v2121_v54, %v2113_v32  ;;  %v4917_v54 = vld [vmem:[%s6865_s2 + $0x2] sm:$0x3] }
 0x204   :  { %5076 = vmatprep.mubr.msk.bf16.mxu1 %vm1212_vm15, %v2460_v40  ;;  %v2130_v9 = vcombine.low %v1953_v44, %v6107_v48  ;;  %v2138_v2 = vcombine.low %v6110_v13, %v6136_v61  ;;  %v2503_v7 = vrot.slane %v4891_v53, %v6056_v1  ;;  %v2170_v26 = vcombine.low %v6126_v41, %v6157_v55  ;;  %v5208_v61 = vld [vmem:[#allocation2 + $0x50] sm:$0xff]  }
 0x205   :  { %5077 = vmatmul.mubr.msk.bf16.vlgmr.msra.gmra.mrb[0].mxu1 %vm1212_vm15, %v2477_v6  ;;  %v2154_v56 = vcombine.low %v6180_v46, %v6198_v23  ;;  %v4901_v31 = vpack.c.bf16 %v2105_v45, %v2097_v21  ;;  %v2122_v48 = vcombine.low %v6060_v62, %v6074_v39  ;;  %v2153_v13 = vrot.slane %v2146_v15, %v6056_v1 }
 0x206   :  { %5085 = vmatpush3.bf16.msra.mxu1 %v6041_v57  ;;  %5080 = vmatprep.mubr.msk.bf16.mxu1 %vm1212_vm15, %v2494_v27  ;;  %v2055_v28 = vcombine.high %v6226_v43, %v6226_v43  ;;  %v2510_v41 = vrot.slane %v4892_v22, %v6056_v1  ;;  %v2178_v55 = vcombine.low %v2037_v49, %v6160_v38 }
 0x207   :  { %5086 = vmatprep.subr.bf16.mxu1 %v5207_v10  ;;  %v2644_v12 = vrot.slane %v4902_v63, %v6056_v1  ;;  %v2169_v57 = vrot.slane %v2162_v59, %v6056_v1  ;;  %v2137_v46 = vrot.slane %v2130_v9, %v6056_v1  ;;  %v2145_v23 = vrot.slane %v2138_v2, %v6056_v1 }
 0x208   :  { %v2511_v62 = vcombine.low %v2503_v7, %v2510_v41  ;;  %v2177_v39 = vrot.slane %v2170_v26, %v6056_v1  ;;  %v2161_v52 = vrot.slane %v2154_v56, %v6056_v1  ;;  %v2637_v43 = vrot.slane %v4901_v31, %v6056_v1 }
 0x209   :  { %v2129_v33 = vrot.slane %v2122_v48, %v6056_v1  ;;  %v4904_v24 = vpack.c.bf16 %v2153_v13, %v2145_v23  ;;  %v2088_v38 = vcombine.high %v6218_v50, %v6218_v50  ;;  %v2194_v32 = vcombine.low %v2055_v28, %v6164_v4 }
 0x20a   :  { %5087 = vmatpush3.bf16.msra.mxu1 %v5207_v10  ;;  %v2185_v60 = vrot.slane %v2178_v55, %v6056_v1  ;;  %v2645_v16 = vcombine.low %v2637_v43, %v2644_v12  ;;  %v4905_v29 = vpack.c.bf16 %v2169_v57, %v2161_v52  ;;  %v2202_v34 = vcombine.low %v6177_v42, %v6207_v35 }
 0x20b   :  { %5088 = vmatprep.subr.bf16.mxu1 %v5208_v61  ;;  %v4903_v20 = vpack.c.bf16 %v2137_v46, %v2129_v33  ;;  %v2186_v0 = vcombine.low %v6223_v14, %v6236_v5  ;;  %v2661_v4 = vrot.slane %v4904_v24, %v6056_v1  ;;  %v2210_v19 = vcombine.low %v2088_v38, %v6191_v47 }
 0x20c   :  { %v4906_v50 = vpack.c.bf16 %v2185_v60, %v2177_v39  ;;  %v2201_v25 = vrot.slane %v2194_v32, %v6056_v1  ;;  %v2671_v17 = vrot.slane %v4905_v29, %v6056_v1  ;;  %v2209_v35 = vrot.slane %v2202_v34, %v6056_v1 }
 0x20d   :  { %5081 = vmatmul.mubr.msk.bf16.gmra.mrb[4].mxu1 %vm1212_vm15, %v2511_v62  ;;  %v2654_v42 = vrot.slane %v4903_v20, %v6056_v1  ;;  %v2193_v14 = vrot.slane %v2186_v0, %v6056_v1  ;;  %v2217_v3 = vrot.slane %v2210_v19, %v6056_v1  ;;  %v2803_v45 = vrot.slane %v4917_v54, %v5990_v18  ;;  %v5210_v0 = vld [vmem:[#allocation2 + $0x80] sm:$0xff]  }
 0x20e   :  { %5089 = vmatpush3.bf16.msra.mxu1 %v5208_v61  ;;  %5092 = vmatprep.mubr.msk.bf16.mxu1 %vm1212_vm15, %v2645_v16  ;;  %v2678_v5 = vrot.slane %v4906_v50, %v6056_v1  ;;  %v6342_v46 = vrot.slane %v4917_v54, %v5979_v11  ;;  %v5335_v24 = vmov 0.0   ;;  %v5212_v19 = vld [vmem:[#allocation2 + $0xa0] sm:$0xff]  }
 0x20f   :  { %5090 = vmatprep.subr.bf16.mxu1 %v5209_v37  ;;  %v2662_v51 = vcombine.low %v2654_v42, %v2661_v4  ;;  %v4907_v30 = vpack.c.bf16 %v2201_v25, %v2193_v14  ;;  %v4908_v47 = vpack.c.bf16 %v2217_v3, %v2209_v35  ;;  %5120 = vmatprep.subr.bf16.mxu0 %v5335_v24  ;;  %v5211_v4 = vld [vmem:[#allocation2 + $0x88] sm:$0xff]   ;;  %v5215_v42 = vld [vmem:[#allocation2 + $0xb0] sm:$0xff]   ;;  %v5216_v35 = vld [vmem:[#allocation2 + $0x98] sm:$0xff]  }
 0x210   :  { %v2679_v58 = vcombine.low %v2671_v17, %v2678_v5  ;;  %5121 = vmatpush3.bf16.msra.mxu0 %v5210_v0  ;;  %v5213_v25 = vld [vmem:[#allocation2 + $0xa8] sm:$0xff]   ;;  %v5214_v17 = vld [vmem:[#allocation2 + $0x90] sm:$0xff]   ;;  %v5217_v14 = vld [vmem:[#allocation2 + $0xb8] sm:$0xff]   ;;  %5128 = vmatprep.mubr.msk.bf16.mxu0 %vm5336_vm0, %v5335_v24 }
 0x211   :  { %v2688_v36 = vrot.slane %v4907_v30, %v6056_v1  ;;  %v2695_v6 = vrot.slane %v4908_v47, %v6056_v1  ;;  %5122 = vmatprep.subr.bf16.mxu0 %v5335_v24 }
 0x212   :  { %5091 = vmatpush3.bf16.msra.mxu1 %v5209_v37 }
 0x213   :  { %v2696_v53 = vcombine.low %v2688_v36, %v2695_v6  ;;  %5100 = vmatprep.subr.bf16.mxu1 %v5335_v24 }
 0x214   :  { %5123 = vmatpush3.bf16.msra.mxu0 %v5211_v4 }
 0x215   :  { %5093 = vmatmul.mubr.msk.bf16.vlgmr.msra.gmra.mrb[0].mxu1 %vm1212_vm15, %v2662_v51  ;;  %5124 = vmatprep.subr.bf16.mxu0 %v5335_v24 }
 0x216   :  { %5096 = vmatprep.mubr.msk.bf16.mxu1 %vm1212_vm15, %v2679_v58  ;;  %5101 = vmatpush3.bf16.msra.mxu1 %v5212_v19 }
 0x217   :  { %5102 = vmatprep.subr.bf16.mxu1 %v5335_v24 }
 0x218   :  { %5125 = vmatpush3.bf16.msra.mxu0 %v5214_v17 }
 0x219   :  { %5126 = vmatprep.subr.bf16.mxu0 %v5335_v24 }
 0x21a   :  { %5103 = vmatpush3.bf16.msra.mxu1 %v5213_v25 }
 0x21b   :  { %5104 = vmatprep.subr.bf16.mxu1 %v5335_v24 }
 0x21c   :  { %5127 = vmatpush3.bf16.msra.mxu0 %v5216_v35 }
 0x21d   :  { %5097 = vmatmul.mubr.msk.bf16.gmra.mrb[4].mxu1 %vm1212_vm15, %v2696_v53  ;;  %5152 = vmatprep.subr.bf16.mxu0 %v5335_v24 }
 0x21e   :  { %5105 = vmatpush3.bf16.msra.mxu1 %v5215_v42  ;;  %5108 = vmatprep.mubr.msk.bf16.mxu1 %vm5336_vm0, %v5335_v24 }
 0x21f   :  { %5106 = vmatprep.subr.bf16.mxu1 %v5335_v24 }
 0x222   :  { %5107 = vmatpush3.bf16.msra.mxu1 %v5217_v14 }
 0x223   :  { %5140 = vmatprep.subr.bf16.mxu1 %v5335_v24 }
 0x2e8   :  { %v5094_v40 = vpop.f32.mrb[0].mxu1 }
 0x2e9   :  { %v2806_v27 = vadd.f32 %v5094_v40, %v2803_v45  ;;  %v2767_v44 = vpop.f32.mrb[1].mxu1 }
 0x2ea   :  { %v2804_v15 = vadd.f32 %v2803_v45, %v2767_v44  ;;  %v5095_v10 = vpop.f32.mrb[2].mxu1 }
 0x2eb   :  { %5250 = vtanh.f32 %v2806_v27  ;;  %v2770_v22 = vpop.f32.mrb[3].mxu1  ;;  %v2807_v21 = vadd.f32 %v5095_v10, %v2803_v45 }
 0x2ec   :  { %5252 = vtanh.f32 %v2804_v15  ;;  %v2805_v49 = vadd.f32 %v2803_v45, %v2770_v22 }
 0x2ee   :  { %5254 = vtanh.f32 %v2805_v49 }
 0x2ef   :  { %5256 = vtanh.f32 %v2807_v21 }
 0x2f0   :  { %v5098_v1 = vpop.f32.mrb[4].mxu1 }
 0x2f1   :  { %v2810_v59 = vadd.f32 %v5098_v1, %v2803_v45  ;;  %v2783_v63 = vpop.f32.mrb[5].mxu1 }
 0x2f2   :  { %v2808_v9 = vadd.f32 %v2803_v45, %v2783_v63  ;;  %v5099_v2 = vpop.f32.mrb[6].mxu1 }
 0x2f3   :  { %v2786_v7 = vpop.f32.mrb[7].mxu1  ;;  %v2811_v26 = vadd.f32 %v5099_v2, %v2803_v45 }
 0x2f4   :  { %5258 = vtanh.f32 %v2808_v9  ;;  %v2809_v56 = vadd.f32 %v2803_v45, %v2786_v7 }
 0x2f5   :  { %v6329_v31 = vpop.eup %5250  ;;  %5260 = vtanh.f32 %v2810_v59 }
 0x2f6   :  { %v6331_v48 = vpop.eup %5252  ;;  %5262 = vtanh.f32 %v2809_v56  ;;  %v2822_v55 = vmul.f32 0.5, %v6329_v31 }
 0x2f7   :  { %v2820_v13 = vmul.f32 0.5, %v6331_v48  ;;  %5264 = vtanh.f32 %v2811_v26 }
 0x2f8   :  { %v6334_v28 = vpop.eup %5254  ;;  %v2830_v23 = vadd.f32 0.5, %v2822_v55 }
 0x2f9   :  { %v2828_v61 = vadd.f32 0.5, %v2820_v13  ;;  %v2821_v41 = vmul.f32 0.5, %v6334_v28  ;;  %v6338_v12 = vpop.eup %5256 }
 0x2fa   :  { %v2823_v62 = vmul.f32 0.5, %v6338_v12 }
 0x2fb   :  { %2844 = vrot.lane.b32.xlu1 %v2828_v61, %s5331_s22  ;;  %v2829_v57 = vadd.f32 0.5, %v2821_v41 }
 0x2fc   :  { %v2831_v38 = vadd.f32 0.5, %v2823_v62 }
 0x2fd   :  { %2846 = vrot.lane.b32.xlu0 %v2829_v57, %s5331_s22 }
 0x2fe   :  { %v6346_v39 = vpop.eup %5258 }
 0x2ff   :  { %v6348_v52 = vpop.eup %5260  ;;  %2848 = vrot.lane.b32.xlu1 %v2830_v23, %s5331_s22  ;;  %v2824_v43 = vmul.f32 0.5, %v6346_v39 }
 0x300   :  { %v6352_v33 = vpop.eup %5262  ;;  %v2826_v16 = vmul.f32 0.5, %v6348_v52 }
 0x301   :  { %2889 = vrot.lane.b32.xlu0 %v6342_v46, %s5331_s22  ;;  %v2825_v32 = vmul.f32 0.5, %v6352_v33  ;;  %v6359_v37 = vpop.eup %5264  ;;  %v2832_v60 = vadd.f32 0.5, %v2824_v43 }
 0x302   :  { %v2827_v20 = vmul.f32 0.5, %v6359_v37  ;;  %v2834_v34 = vadd.f32 0.5, %v2826_v16 }
 0x303   :  { %2850 = vrot.lane.b32.xlu1 %v2831_v38, %s5331_s22  ;;  %v2833_v29 = vadd.f32 0.5, %v2825_v32 }
 0x304   :  { %v2835_v50 = vadd.f32 0.5, %v2827_v20 }
 0x305   :  { %2852 = vrot.lane.b32.xlu0 %v2832_v60, %s5331_s22 }
 0x307   :  { %2854 = vrot.lane.b32.xlu1 %v2833_v29, %s5331_s22 }
 0x309   :  { %2856 = vrot.lane.b32.xlu0 %v2834_v34, %s5331_s22 }
 0x30b   :  { %2858 = vrot.lane.b32.xlu1 %v2835_v50, %s5331_s22 }
 0x36d   :  { %v2845_v5 = vpop.permute.xlu1 %2844 }
 0x36e   :  { %v2868_v3 = vmul.f32 %v6331_v48, %v2845_v5 }
 0x36f   :  { %v2847_v51 = vpop.permute.xlu0 %2846 }
 0x370   :  { %v2869_v30 = vmul.f32 %v6334_v28, %v2847_v51  ;;  %v2880_v47 = vmul.f32 %v6342_v46, %v2868_v3 }
 0x371   :  { %v2849_v58 = vpop.permute.xlu1 %2848 }
 0x372   :  { %v2881_v36 = vmul.f32 %v6342_v46, %v2869_v30  ;;  %v2870_v6 = vmul.f32 %v6329_v31, %v2849_v58 }
 0x373   :  { %v6385_v53 = vpop.permute.xlu0 %2889 }
 0x374   :  { %v2882_v54 = vmul.f32 %v6342_v46, %v2870_v6  ;;  %v2892_v45 = vadd.f32 %v6385_v53, %v2880_v47  ;;  %v2893_v40 = vadd.f32 %v6385_v53, %v2881_v36 }
 0x375   :  { %v2851_v27 = vpop.permute.xlu1 %2850 }
 0x376   :  { %v2894_v44 = vadd.f32 %v6385_v53, %v2882_v54  ;;  %v2908_v15 = vcombine.high %v2892_v45, %v2892_v45  ;;  %v2909_v10 = vcombine.high %v2893_v40, %v2893_v40  ;;  %v2924_v22 = vpack.c.bf16 %v2892_v45, %v2892_v45 }
 0x377   :  { %v2926_v21 = vpack.c.bf16 %v2893_v40, %v2893_v40  ;;  %v2871_v49 = vmul.f32 %v6338_v12, %v2851_v27  ;;  %v2853_v2 = vpop.permute.xlu0 %2852 }
 0x378   :  { %v2910_v1 = vcombine.high %v2894_v44, %v2894_v44  ;;  %v2925_v59 = vpack.c.bf16 %v2908_v15, %v2908_v15  ;;  %v2927_v63 = vpack.c.bf16 %v2909_v10, %v2909_v10  ;;  %v2928_v9 = vpack.c.bf16 %v2894_v44, %v2894_v44 }
 0x379   :  { %v2962_v7 = vrot.slane %v2924_v22, %v5377_v8  ;;  %v3006_v26 = vrot.slane %v2926_v21, %v5377_v8  ;;  %v2883_v41 = vmul.f32 %v6342_v46, %v2871_v49  ;;  %v2872_v57 = vmul.f32 %v6346_v39, %v2853_v2  ;;  %v2855_v38 = vpop.permute.xlu1 %2854 }
 0x37a   :  { %v2984_v56 = vrot.slane %v2925_v59, %v5377_v8  ;;  %v3028_v31 = vrot.slane %v2927_v63, %v5377_v8  ;;  %v3050_v48 = vrot.slane %v2928_v9, %v5377_v8  ;;  %v2929_v55 = vpack.c.bf16 %v2910_v1, %v2910_v1 }
 0x37b   :  { %v2963_v13 = vcombine.high %v2962_v7, %v2962_v7  ;;  %v6398_v28 = vrot.slane %v2962_v7, %v5377_v8  ;;  %v3007_v61 = vcombine.high %v3006_v26, %v3006_v26  ;;  %v6406_v62 = vrot.slane %v3006_v26, %v5377_v8  ;;  %v2857_v20 = vpop.permute.xlu0 %2856 }
 0x37c   :  { %v2985_v12 = vcombine.high %v2984_v56, %v2984_v56  ;;  %v6403_v23 = vrot.slane %v2984_v56, %v5377_v8  ;;  %v3051_v43 = vcombine.high %v3050_v48, %v3050_v48  ;;  %v3029_v16 = vcombine.high %v3028_v31, %v3028_v31 }
 0x37d   :  { %v6409_v32 = vrot.slane %v2963_v13, %v5377_v8  ;;  %v6412_v60 = vrot.slane %v3007_v61, %v5377_v8  ;;  %v6415_v29 = vrot.slane %v3028_v31, %v5377_v8  ;;  %v3309_v39 = vunpack.i.h.s16 %v6398_v28 }
 0x37e   :  { %v2895_v34 = vadd.f32 %v6385_v53, %v2883_v41  ;;  %v3058_v0 = vrot.slane %v3050_v48, %v5377_v8  ;;  %v3065_v50 = vrot.slane %v3051_v43, %v5377_v8  ;;  %v6422_v4 = vrot.slane %v2985_v12, %v5377_v8 }
 0x37f   :  { %v3072_v19 = vrot.slane %v2929_v55, %v5377_v8  ;;  %v2884_v25 = vmul.f32 %v6342_v46, %v2872_v57  ;;  %v2873_v17 = vmul.f32 %v6352_v33, %v2855_v38  ;;  %v2874_v5 = vmul.f32 %v6348_v52, %v2857_v20 }
 0x380   :  { %v2911_v42 = vcombine.high %v2895_v34, %v2895_v34  ;;  %v2930_v35 = vpack.c.bf16 %v2895_v34, %v2895_v34  ;;  %v3321_v14 = vunpack.i.h.s16 %v3058_v0  ;;  %v3360_v30 = vunpack.i.h.s16 %v3065_v50 }
 0x381   :  { %v3073_v3 = vcombine.high %v3072_v19, %v3072_v19  ;;  %v3080_v51 = vrot.slane %v3072_v19, %v5377_v8  ;;  %v2896_v58 = vadd.f32 %v6385_v53, %v2884_v25  ;;  %v6431_v47 = vrot.slane %v3029_v16, %v5377_v8 }
 0x382   :  { %v3312_v36 = vunpack.i.h.s16 %v6403_v23  ;;  %v2931_v6 = vpack.c.bf16 %v2911_v42, %v2911_v42  ;;  %v3094_v54 = vrot.slane %v2930_v35, %v5377_v8  ;;  %v2885_v52 = vmul.f32 %v6342_v46, %v2873_v17 }
 0x383   :  { %v6436_v33 = vrot.slane %v3073_v3, %v5377_v8  ;;  %v3324_v45 = vunpack.i.h.s16 %v3080_v51  ;;  %v2912_v40 = vcombine.high %v2896_v58, %v2896_v58  ;;  %v2932_v10 = vpack.c.bf16 %v2896_v58, %v2896_v58 }
 0x384   :  { %v3095_v27 = vcombine.high %v3094_v54, %v3094_v54  ;;  %v6440_v44 = vrot.slane %v3094_v54, %v5377_v8  ;;  %v3116_v15 = vrot.slane %v2931_v6, %v5377_v8  ;;  %v4920_v22 = vpack.i.b16 %v3065_v50, %v3321_v14 }
 0x385   :  { %v3397_v21 = vpack.i.b16 %v3324_v45, %v3360_v30  ;;  %v2933_v49 = vpack.c.bf16 %v2912_v40, %v2912_v40  ;;  %v2886_v1 = vmul.f32 %v6342_v46, %v2874_v5  ;;  %v4937_v2 = vpack.i.b16 %v3080_v51, %v3065_v50  ;;  %v2859_v5 = vpop.permute.xlu1 %2858 }
 0x386   :  { %v3109_v59 = vrot.slane %v3095_v27, %v5377_v8  ;;  %v3117_v63 = vcombine.high %v3116_v15, %v3116_v15  ;;  %v3124_v9 = vrot.slane %v3116_v15, %v5377_v8  ;;  %v3327_v7 = vunpack.i.h.s16 %v6440_v44 }
 0x387   :  { %v6448_v26 = vpack.i.b16 %v6436_v33, %v3324_v45  ;;  %v3138_v56 = vrot.slane %v2932_v10, %v5377_v8  ;;  %v3160_v31 = vrot.slane %v2933_v49, %v5377_v8  ;;  %v3417_v41 = vcombine.low %v4920_v22, %v3397_v21 }
 0x388   :  { %v6453_v48 = vrot.slane %v3117_v63, %v5377_v8  ;;  %v3330_v13 = vunpack.i.h.s16 %v3124_v9  ;;  %v3362_v61 = vunpack.i.h.s16 %v3109_v59  ;;  %v3315_v55 = vunpack.i.h.s16 %v6406_v62 }
 0x389   :  { %v3318_v12 = vunpack.i.h.s16 %v6415_v29  ;;  %v3139_v57 = vcombine.high %v3138_v56, %v3138_v56  ;;  %v3146_v43 = vrot.slane %v3138_v56, %v5377_v8  ;;  %v6460_v16 = vcombine.low %v3058_v0, %v4937_v2 }
 0x38a   :  { %v6458_v38 = vpack.i.b16 %v3330_v13, %v3362_v61  ;;  %v3161_v20 = vcombine.high %v3160_v31, %v3160_v31  ;;  %v3168_v34 = vrot.slane %v3160_v31, %v5377_v8  ;;  %v4940_v50 = vpack.i.b16 %v6453_v48, %v3330_v13 }
 0x38b   :  { %v3153_v19 = vrot.slane %v3139_v57, %v5377_v8  ;;  %v2897_v25 = vadd.f32 %v6385_v53, %v2885_v52  ;;  %v2898_v17 = vadd.f32 %v6385_v53, %v2886_v1  ;;  %v6467_v42 = vpack.i.b16 %v3109_v59, %v3327_v7 }
 0x38c   :  { %v6470_v35 = vrot.slane %v3417_v41, %v5377_v8  ;;  %v3724_v0 = vcombine.low %v6448_v26, %v6440_v44  ;;  %v3333_v14 = vunpack.i.h.s16 %v3146_v43  ;;  %v4939_v3 = vpack.i.b16 %v3124_v9, %v3109_v59 }
 0x38d   :  { %v6475_v51 = vrot.slane %v3161_v20, %v5377_v8  ;;  %v3336_v30 = vunpack.i.h.s16 %v3168_v34  ;;  %v2913_v58 = vcombine.high %v2897_v25, %v2897_v25  ;;  %v3364_v6 = vunpack.i.h.s16 %v3153_v19 }
 0x38e   :  { %v2934_v54 = vpack.c.bf16 %v2897_v25, %v2897_v25  ;;  %v2914_v45 = vcombine.high %v2898_v17, %v2898_v17  ;;  %v2936_v40 = vpack.c.bf16 %v2898_v17, %v2898_v17  ;;  %v3464_v52 = vcombine.low %v6458_v38, %v6453_v48 }
 0x38f   :  { %v6479_v27 = vcombine.low %v4939_v3, %v4940_v50  ;;  %v2935_v15 = vpack.c.bf16 %v2913_v58, %v2913_v58  ;;  %v2875_v10 = vmul.f32 %v6359_v37, %v2859_v5  ;;  %v6482_v22 = vpack.i.b16 %v3153_v19, %v3333_v14 }
 0x390   :  { %v3182_v21 = vrot.slane %v2934_v54, %v5377_v8  ;;  %v2937_v49 = vpack.c.bf16 %v2914_v45, %v2914_v45  ;;  %v3226_v1 = vrot.slane %v2936_v40, %v5377_v8  ;;  %v4941_v59 = vpack.i.b16 %v3168_v34, %v3153_v19 }
 0x391   :  { %v6487_v63 = vpack.i.b16 %v6475_v51, %v3336_v30  ;;  %v3204_v9 = vrot.slane %v2935_v15, %v5377_v8  ;;  %v2887_v2 = vmul.f32 %v6342_v46, %v2875_v10  ;;  %v6491_v7 = vpack.i.b16 %v3336_v30, %v3364_v6 }
 0x392   :  { %v3183_v56 = vcombine.high %v3182_v21, %v3182_v21  ;;  %v6494_v37 = vrot.slane %v3182_v21, %v5377_v8  ;;  %v3227_v31 = vcombine.high %v3226_v1, %v3226_v1  ;;  %v6498_v41 = vrot.slane %v3226_v1, %v5377_v8 }
 0x393   :  { %v3205_v13 = vcombine.high %v3204_v9, %v3204_v9  ;;  %v3212_v61 = vrot.slane %v3204_v9, %v5377_v8  ;;  %v3248_v57 = vrot.slane %v2937_v49, %v5377_v8  ;;  %v2899_v50 = vadd.f32 %v6385_v53, %v2887_v2 }
 0x394   :  { %v3197_v20 = vrot.slane %v3183_v56, %v5377_v8  ;;  %v3339_v34 = vunpack.i.h.s16 %v6494_v37  ;;  %v6504_v46 = vrot.slane %v3227_v31, %v5377_v8  ;;  %v6511_v5 = vcombine.low %v3146_v43, %v4941_v59 }
 0x395   :  { %v6508_v19 = vrot.slane %v3205_v13, %v5377_v8  ;;  %v3342_v25 = vunpack.i.h.s16 %v3212_v61  ;;  %v3249_v17 = vcombine.high %v3248_v57, %v3248_v57  ;;  %v3256_v14 = vrot.slane %v3248_v57, %v5377_v8 }
 0x396   :  { %v3366_v3 = vunpack.i.h.s16 %v3197_v20  ;;  %v4933_v30 = vpack.i.b16 %v6403_v23, %v6409_v32  ;;  %v4934_v58 = vpack.i.b16 %v6422_v4, %v3312_v36  ;;  %v4935_v45 = vpack.i.b16 %v6415_v29, %v6412_v60 }
 0x397   :  { %v4944_v6 = vpack.i.b16 %v6508_v19, %v3342_v25  ;;  %v6520_v53 = vrot.slane %v3249_v17, %v5377_v8  ;;  %v3348_v54 = vunpack.i.h.s16 %v3256_v14  ;;  %v6524_v40 = vpack.i.b16 %v3197_v20, %v3339_v34 }
 0x398   :  { %v4943_v43 = vpack.i.b16 %v3212_v61, %v3197_v20  ;;  %v3727_v15 = vcombine.low %v6487_v63, %v6494_v37  ;;  %v2915_v10 = vcombine.high %v2899_v50, %v2899_v50  ;;  %v6528_v21 = vpack.i.b16 %v3342_v25, %v3366_v3 }
 0x399   :  { %v3345_v49 = vunpack.i.h.s16 %v6498_v41  ;;  %v3368_v1 = vunpack.i.h.s16 %v6504_v46  ;;  %v2938_v59 = vpack.c.bf16 %v2899_v50, %v2899_v50  ;;  %v4945_v2 = vpack.i.b16 %v3256_v14, %v6504_v46 }
 0x39a   :  { %v6532_v9 = vcombine.low %v4943_v43, %v4944_v6  ;;  %v2939_v56 = vpack.c.bf16 %v2915_v10, %v2915_v10  ;;  %v4936_v31 = vpack.i.b16 %v6431_v47, %v3318_v12  ;;  %v6539_v13 = vpack.i.b16 %v6520_v53, %v3348_v54 }
 0x39b   :  { %v3270_v63 = vrot.slane %v2938_v59, %v5377_v8  ;;  %v3675_v37 = vcombine.low %v6398_v28, %v4933_v30  ;;  %v3676_v61 = vcombine.low %v4934_v58, %v6406_v62  ;;  %v3706_v34 = vrot.slane %v6460_v16, %v5377_v8 }
 0x39c   :  { %v3292_v57 = vrot.slane %v2939_v56, %v5377_v8  ;;  %v3677_v20 = vcombine.low %v4935_v45, %v4936_v31  ;;  %v3356_v50 = vunpack.i.h.s16 %v6409_v32  ;;  %v3358_v43 = vunpack.i.h.s16 %v6412_v60 }
 0x39d   :  { %v3271_v25 = vcombine.high %v3270_v63, %v3270_v63  ;;  %v3278_v17 = vrot.slane %v3270_v63, %v5377_v8  ;;  %v3685_v14 = vrot.slane %v3675_v37, %v5377_v8  ;;  %v3692_v3 = vrot.slane %v3676_v61, %v5377_v8 }
 0x39e   :  { %v3293_v6 = vcombine.high %v3292_v57, %v3292_v57  ;;  %v3300_v30 = vrot.slane %v3292_v57, %v5377_v8  ;;  %v3699_v58 = vrot.slane %v3677_v20, %v5377_v8  ;;  %v6554_v45 = vpack.i.b16 %v3348_v54, %v3368_v1 }
 0x39f   :  { %v3774_v16 = vcombine.low %v6498_v41, %v4945_v2  ;;  %v3285_v10 = vrot.slane %v3271_v25, %v5377_v8  ;;  %v3707_v59 = vcombine.low %v3685_v14, %v3692_v3  ;;  %v3391_v37 = vpack.i.b16 %v3312_v36, %v3356_v50 }
 0x3a0   :  { %v6559_v56 = vrot.slane %v3293_v6, %v5377_v8  ;;  %v3354_v31 = vunpack.i.h.s16 %v3300_v30  ;;  %v3708_v63 = vcombine.low %v3699_v58, %v3706_v34  ;;  %v3351_v61 = vunpack.i.h.s16 %v3278_v17 }
 0x3a1   :  { %v3775_v57 = vcombine.low %v6539_v13, %v3278_v17  ;;  %v3715_v20 = vrot.slane %v3707_v59, %v5377_v8  ;;  %v4918_v54 = vpack.i.b16 %v6409_v32, %v3309_v39  ;;  %v4919_v34 = vpack.i.b16 %v6412_v60, %v3315_v55 }
 0x3a2   :  { %v4948_v1 = vpack.i.b16 %v6559_v56, %v3354_v31  ;;  %v3722_v2 = vrot.slane %v3708_v63, %v5377_v8  ;;  %v3394_v23 = vpack.i.b16 %v3318_v12, %v3358_v43  ;;  %v3370_v36 = vunpack.i.h.s16 %v3285_v10 }
 0x3a3   :  { %v4947_v50 = vpack.i.b16 %v3300_v30, %v3285_v10  ;;  %v3414_v13 = vcombine.low %v4918_v54, %v3391_v37  ;;  %v3741_v25 = vrot.slane %v6479_v27, %v5377_v8  ;;  %v3415_v32 = vcombine.low %v6422_v4, %v4919_v34 }
 0x3a4   :  { %v3723_v28 = vcombine.low %v3715_v20, %v3722_v2  ;;  %v3416_v39 = vcombine.low %v3394_v23, %v6431_v47  ;;  %v3734_v62 = vrot.slane %v3724_v0, %v5377_v8  ;;  %v4925_v60 = vpack.i.b16 %v3285_v10, %v3351_v61 }
 0x3a5   :  { %v3424_v29 = vrot.slane %v3414_v13, %v5377_v8  ;;  %v3748_v55 = vrot.slane %v6511_v5, %v5377_v8  ;;  %v3755_v12 = vrot.slane %v3727_v15, %v5377_v8  ;;  %v3776_v17 = vcombine.low %v4947_v50, %v4948_v1 }
 0x3a6   :  { %5129 = vmatmul.mubr.msk.bf16.vlgmr.msra.gmra.mrb[12].mxu0 %vm1212_vm15, %v3723_v28  ;;  %v3431_v4 = vrot.slane %v3415_v32, %v5377_v8  ;;  %v3438_v47 = vrot.slane %v3416_v39, %v5377_v8  ;;  %v3756_v27 = vcombine.low %v3734_v62, %v3741_v25  ;;  %v3463_v26 = vcombine.low %v6436_v33, %v6467_v42  ;;  %v4956_v32 = vld [vmem:[%s6865_s2 + $0x4] sm:$0x3] }
 0x3a7   :  { %5132 = vmatprep.mubr.msk.bf16.mxu0 %vm5336_vm0, %v5335_v24  ;;  %v3757_v44 = vcombine.low %v3748_v55, %v3755_v12  ;;  %v3465_v0 = vcombine.low %v6482_v22, %v6491_v7  ;;  %v3466_v5 = vcombine.low %v6475_v51, %v6524_v40  ;;  %v3412_v15 = vpack.i.b16 %v3354_v31, %v3370_v36 }
 0x3a8   :  { %v3446_v14 = vcombine.low %v3424_v29, %v3431_v4  ;;  %v3447_v3 = vcombine.low %v3438_v47, %v6470_v35  ;;  %v3480_v6 = vrot.slane %v3464_v52, %v5377_v8  ;;  %v3764_v30 = vrot.slane %v3756_v27, %v5377_v8 }
 0x3a9   :  { %v3771_v58 = vrot.slane %v3757_v44, %v5377_v8  ;;  %v3487_v33 = vrot.slane %v3465_v0, %v5377_v8  ;;  %v3494_v42 = vrot.slane %v3466_v5, %v5377_v8  ;;  %v3783_v35 = vrot.slane %v6532_v9, %v5377_v8 }
 0x3aa   :  { %v3454_v22 = vrot.slane %v3446_v14, %v5377_v8  ;;  %v3461_v51 = vrot.slane %v3447_v3, %v5377_v8  ;;  %v3790_v7 = vrot.slane %v3774_v16, %v5377_v8  ;;  %v3473_v48 = vrot.slane %v3463_v26, %v5377_v8 }
 0x3ab   :  { %v3772_v40 = vcombine.low %v3764_v30, %v3771_v58  ;;  %v3797_v38 = vrot.slane %v3775_v57, %v5377_v8  ;;  %v3804_v52 = vrot.slane %v3776_v17, %v5377_v8  ;;  %v4924_v43 = vpack.i.b16 %v6504_v46, %v3345_v49 }
 0x3ac   :  { %v3515_v10 = vcombine.low %v3412_v15, %v6559_v56  ;;  %v3462_v59 = vcombine.low %v3454_v22, %v3461_v51  ;;  %v3496_v31 = vcombine.low %v3487_v33, %v3494_v42  ;;  %v3495_v63 = vcombine.low %v3473_v48, %v3480_v6 }
 0x3ad   :  { %v3806_v37 = vcombine.low %v3797_v38, %v3804_v52  ;;  %v3805_v9 = vcombine.low %v3783_v35, %v3790_v7  ;;  %v3513_v16 = vcombine.low %v4924_v43, %v6554_v45  ;;  %v3514_v61 = vcombine.low %v6520_v53, %v4925_v60 }
 0x3ae   :  { %5109 = vmatmul.mubr.msk.bf16.vlgmr.msra.gmra.mrb[8].mxu1 %vm1212_vm15, %v3462_v59  ;;  %5133 = vmatmul.mubr.msk.bf16.gmra.mrb[16].mxu0 %vm1212_vm15, %v3772_v40  ;;  %v3512_v41 = vcombine.low %v6528_v21, %v6508_v19  ;;  %v3510_v46 = vrot.slane %v3496_v31, %v5377_v8  ;;  %v3543_v56 = vrot.slane %v3515_v10, %v5377_v8 }
 0x3af   :  { %5112 = vmatprep.mubr.msk.bf16.mxu1 %vm5336_vm0, %v5335_v24  ;;  %5136 = vmatprep.mubr.msk.bf16.mxu0 %vm5336_vm0, %v5335_v24  ;;  %v3820_v49 = vrot.slane %v3806_v37, %v5377_v8  ;;  %v3503_v57 = vrot.slane %v3495_v63, %v5377_v8  ;;  %v3813_v45 = vrot.slane %v3805_v9, %v5377_v8 }
 0x3b0   :  { %v3529_v53 = vrot.slane %v3513_v16, %v5377_v8  ;;  %v3536_v20 = vrot.slane %v3514_v61, %v5377_v8  ;;  %v3522_v2 = vrot.slane %v3512_v41, %v5377_v8  ;;  %v3917_v39 = vrot.slane %v4956_v32, %v5990_v18 }
 0x3b1   :  { %v3511_v54 = vcombine.low %v3503_v57, %v3510_v46  ;;  %v3821_v1 = vcombine.low %v3813_v45, %v3820_v49  ;;  %v6655_v45 = vrot.slane %v4956_v32, %v5979_v11  ;;  %v5224_v32 = vld [vmem:[#allocation2 + $0xf8] sm:$0xff]  }
 0x3b2   :  { %v3545_v34 = vcombine.low %v3536_v20, %v3543_v56  ;;  %v3544_v19 = vcombine.low %v3522_v2, %v3529_v53 }
 0x3b4   :  { %v3559_v21 = vrot.slane %v3545_v34, %v5377_v8  ;;  %v3552_v23 = vrot.slane %v3544_v19, %v5377_v8 }
 0x3b6   :  { %5113 = vmatmul.mubr.msk.bf16.gmra.mrb[12].mxu1 %vm1212_vm15, %v3511_v54  ;;  %5137 = vmatmul.mubr.msk.bf16.gmra.mrb[20].mxu0 %vm1212_vm15, %v3821_v1  ;;  %v3560_v36 = vcombine.low %v3552_v23, %v3559_v21  ;;  %v5219_v21 = vld [vmem:[#allocation2 + $0xc0] sm:$0xff]  }
 0x3b7   :  { %5116 = vmatprep.mubr.msk.bf16.mxu1 %vm5336_vm0, %v5335_v24  ;;  %5160 = vmatprep.mubr.msk.bf16.mxu0 %vm5336_vm0, %v5335_v24  ;;  %v5218_v23 = vld [vmem:[#allocation2 + $0xe0] sm:$0xff]  }
 0x3b8   :  { %5153 = vmatpush3.bf16.msra.mxu0 %v5219_v21  ;;  %5141 = vmatpush3.bf16.msra.mxu1 %v5218_v23 }
 0x3b9   :  { %5154 = vmatprep.subr.bf16.mxu0 %v5335_v24  ;;  %5142 = vmatprep.subr.bf16.mxu1 %v5335_v24 }
 0x3be   :  { %5117 = vmatmul.mubr.msk.bf16.gmra.mrb[16].mxu1 %vm1212_vm15, %v3560_v36  ;;  %v5221_v36 = vld [vmem:[#allocation2 + $0xc8] sm:$0xff]  }
 0x3bf   :  { %5148 = vmatprep.mubr.msk.bf16.mxu1 %vm5336_vm0, %v5335_v24  ;;  %5155 = vmatpush3.bf16.msra.mxu0 %v5221_v36 }
 0x3c0   :  { %5156 = vmatprep.subr.bf16.mxu0 %v5335_v24 }
 0x479   :  { %v3889_v50 = vpop.f32.mrb[12].mxu0 }
 0x47a   :  { %v5130_v13 = vpop.f32.mrb[13].mxu0 }
 0x47b   :  { %v3892_v25 = vpop.f32.mrb[14].mxu0  ;;  %v5223_v13 = vld [vmem:[#allocation2 + $0xd0] sm:$0xff]  }
 0x47c   :  { %v5131_v28 = vpop.f32.mrb[15].mxu0  ;;  %5157 = vmatpush3.bf16.msra.mxu0 %v5223_v13 }
 0x47d   :  { %5158 = vmatprep.subr.bf16.mxu0 %v5335_v24  ;;  %v5225_v28 = vld [vmem:[#allocation2 + $0xd8] sm:$0xff]  }
 0x480   :  { %5159 = vmatpush3.bf16.msra.mxu0 %v5225_v28 }
 0x481   :  { %v3628_v62 = vpop.f32.mrb[8].mxu1  ;;  %v3897_v60 = vpop.f32.mrb[16].mxu0 }
 0x482   :  { %v3890_v29 = vadd.f32 %v3889_v50, %v3628_v62  ;;  %v5110_v55 = vpop.f32.mrb[9].mxu1  ;;  %v5134_v12 = vpop.f32.mrb[17].mxu0  ;;  %v5220_v50 = vld [vmem:[#allocation2 + $0xe8] sm:$0xff]  }
 0x483   :  { %v3631_v17 = vpop.f32.mrb[10].mxu1  ;;  %v3900_v4 = vpop.f32.mrb[18].mxu0  ;;  %5143 = vmatpush3.bf16.msra.mxu1 %v5220_v50 }
 0x484   :  { %v3918_v47 = vadd.f32 %v3917_v39, %v3890_v29  ;;  %v3893_v27 = vadd.f32 %v3892_v25, %v3631_v17  ;;  %v5111_v44 = vpop.f32.mrb[11].mxu1  ;;  %v5135_v26 = vpop.f32.mrb[19].mxu0  ;;  %5144 = vmatprep.subr.bf16.mxu1 %v5335_v24  ;;  %v5222_v25 = vld [vmem:[#allocation2 + $0xf0] sm:$0xff]  }
 0x486   :  { %5266 = vtanh.f32 %v3918_v47  ;;  %v3919_v0 = vadd.f32 %v3917_v39, %v3893_v27 }
 0x487   :  { %5145 = vmatpush3.bf16.msra.mxu1 %v5222_v25 }
 0x488   :  { %5268 = vtanh.f32 %v3919_v0  ;;  %5146 = vmatprep.subr.bf16.mxu1 %v5335_v24 }
 0x489   :  { %v3636_v5 = vpop.f32.mrb[12].mxu1  ;;  %v3905_v15 = vpop.f32.mrb[20].mxu0 }
 0x48a   :  { %v3898_v14 = vadd.f32 %v3897_v60, %v3636_v5  ;;  %v5114_v3 = vpop.f32.mrb[13].mxu1  ;;  %v5138_v6 = vpop.f32.mrb[21].mxu0 }
 0x48b   :  { %v3639_v30 = vpop.f32.mrb[14].mxu1  ;;  %v3908_v58 = vpop.f32.mrb[22].mxu0  ;;  %5147 = vmatpush3.bf16.msra.mxu1 %v5224_v32 }
 0x48c   :  { %v3920_v33 = vadd.f32 %v3917_v39, %v3898_v14  ;;  %v3901_v42 = vadd.f32 %v3900_v4, %v3639_v30  ;;  %v5115_v22 = vpop.f32.mrb[15].mxu1  ;;  %v5139_v51 = vpop.f32.mrb[23].mxu0 }
 0x48e   :  { %5270 = vtanh.f32 %v3920_v33  ;;  %v3921_v35 = vadd.f32 %v3917_v39, %v3901_v42 }
 0x490   :  { %v5267_v7 = vpop.eup %5266  ;;  %5272 = vtanh.f32 %v3921_v35 }
 0x491   :  { %v3644_v40 = vpop.f32.mrb[16].mxu1  ;;  %v3930_v48 = vmul.f32 0.5, %v5267_v7 }
 0x492   :  { %v5269_v38 = vpop.eup %5268  ;;  %v3906_v52 = vadd.f32 %v3905_v15, %v3644_v40  ;;  %v5118_v43 = vpop.f32.mrb[17].mxu1 }
 0x493   :  { %v3647_v10 = vpop.f32.mrb[18].mxu1  ;;  %v3936_v59 = vadd.f32 0.5, %v3930_v48  ;;  %v3931_v31 = vmul.f32 0.5, %v5269_v38 }
 0x494   :  { %v3922_v63 = vadd.f32 %v3917_v39, %v3906_v52  ;;  %v3909_v37 = vadd.f32 %v3908_v58, %v3647_v10  ;;  %v5119_v9 = vpop.f32.mrb[19].mxu1 }
 0x495   :  { %3948 = vrot.lane.b32.xlu0 %v3936_v59, %s5331_s22  ;;  %v3937_v61 = vadd.f32 0.5, %v3931_v31 }
 0x496   :  { %5274 = vtanh.f32 %v3922_v63  ;;  %v3923_v16 = vadd.f32 %v3917_v39, %v3909_v37 }
 0x498   :  { %v5271_v41 = vpop.eup %5270  ;;  %5276 = vtanh.f32 %v3923_v16 }
 0x499   :  { %3950 = vrot.lane.b32.xlu0 %v3937_v61, %s5331_s22  ;;  %v3932_v46 = vmul.f32 0.5, %v5271_v41 }
 0x49a   :  { %v5273_v49 = vpop.eup %5272 }
 0x49b   :  { %v3938_v56 = vadd.f32 0.5, %v3932_v46  ;;  %v3933_v57 = vmul.f32 0.5, %v5273_v49 }
 0x49d   :  { %3952 = vrot.lane.b32.xlu0 %v3938_v56, %s5331_s22  ;;  %v3939_v53 = vadd.f32 0.5, %v3933_v57 }
 0x49f   :  { %3954 = vrot.lane.b32.xlu1 %v3939_v53, %s5331_s22 }
 0x4a0   :  { %v6659_v20 = vpop.eup %5274 }
 0x4a1   :  { %3983 = vrot.lane.b32.xlu0 %v6655_v45, %s5331_s22  ;;  %v3934_v54 = vmul.f32 0.5, %v6659_v20 }
 0x4a2   :  { %v6664_v1 = vpop.eup %5276 }
 0x4a3   :  { %v3940_v2 = vadd.f32 0.5, %v3934_v54  ;;  %v3935_v34 = vmul.f32 0.5, %v6664_v1 }
 0x4a5   :  { %3956 = vrot.lane.b32.xlu1 %v3940_v2, %s5331_s22  ;;  %v3941_v19 = vadd.f32 0.5, %v3935_v34 }
 0x4a9   :  { %3958 = vrot.lane.b32.xlu1 %v3941_v19, %s5331_s22 }
 0x507   :  { %v3949_v39 = vpop.permute.xlu0 %3948 }
 0x508   :  { %v3966_v60 = vmul.f32 %v5267_v7, %v3949_v39 }
 0x50a   :  { %v3976_v4 = vmul.f32 %v6655_v45, %v3966_v60 }
 0x50b   :  { %v3951_v62 = vpop.permute.xlu0 %3950 }
 0x50c   :  { %v3967_v29 = vmul.f32 %v5269_v38, %v3951_v62 }
 0x50e   :  { %v3977_v47 = vmul.f32 %v6655_v45, %v3967_v29 }
 0x50f   :  { %v3953_v55 = vpop.permute.xlu0 %3952 }
 0x510   :  { %v3968_v12 = vmul.f32 %v5271_v41, %v3953_v55 }
 0x511   :  { %v3955_v17 = vpop.permute.xlu1 %3954 }
 0x512   :  { %v3978_v27 = vmul.f32 %v6655_v45, %v3968_v12  ;;  %v3969_v44 = vmul.f32 %v5273_v49, %v3955_v17 }
 0x513   :  { %v6678_v26 = vpop.permute.xlu0 %3983 }
 0x514   :  { %v3986_v24 = vadd.f32 %v6678_v26, %v3976_v4  ;;  %v3987_v0 = vadd.f32 %v6678_v26, %v3977_v47  ;;  %v3988_v5 = vadd.f32 %v6678_v26, %v3978_v27  ;;  %v3979_v15 = vmul.f32 %v6655_v45, %v3969_v44 }
 0x516   :  { %v3998_v14 = vcombine.high %v3986_v24, %v3986_v24  ;;  %v4005_v3 = vrot.slane %v3986_v24, %v5377_v8  ;;  %v4046_v6 = vcombine.high %v3987_v0, %v3987_v0  ;;  %v4053_v30 = vrot.slane %v3987_v0, %v5377_v8 }
 0x517   :  { %v4094_v58 = vcombine.high %v3988_v5, %v3988_v5  ;;  %v3989_v7 = vadd.f32 %v6678_v26, %v3979_v15  ;;  %v4101_v40 = vrot.slane %v3988_v5, %v5377_v8 }
 0x518   :  { %v4012_v33 = vrot.slane %v3998_v14, %v5377_v8  ;;  %v4013_v42 = vcombine.high %v4005_v3, %v4005_v3  ;;  %v4060_v22 = vrot.slane %v4046_v6, %v5377_v8  ;;  %v4061_v51 = vcombine.high %v4053_v30, %v4053_v30 }
 0x519   :  { %v4108_v35 = vrot.slane %v4094_v58, %v5377_v8  ;;  %v6692_v48 = vrot.slane %v4005_v3, %v5377_v8  ;;  %v4069_v37 = vrot.slane %v4053_v30, %v5377_v8  ;;  %v4109_v9 = vcombine.high %v4101_v40, %v4101_v40 }
 0x51a   :  { %v4062_v38 = vcombine.high %v4060_v22, %v4060_v22  ;;  %v4014_v52 = vcombine.high %v4012_v33, %v4012_v33  ;;  %v4035_v43 = vrot.slane %v4013_v42, %v5377_v8  ;;  %v4028_v59 = vrot.slane %v4012_v33, %v5377_v8  ;;  %v3957_v42 = vpop.permute.xlu1 %3956 }
 0x51b   :  { %v4110_v10 = vcombine.high %v4108_v35, %v4108_v35  ;;  %v6697_v31 = vrot.slane %v4060_v22, %v5377_v8  ;;  %v6700_v63 = vrot.slane %v4061_v51, %v5377_v8  ;;  %v4141_v16 = vcombine.high %v3989_v7, %v3989_v7 }
 0x51c   :  { %v4043_v61 = vcombine.high %v6692_v48, %v6692_v48  ;;  %v4090_v41 = vrot.slane %v4062_v38, %v5377_v8  ;;  %v4117_v46 = vrot.slane %v4101_v40, %v5377_v8  ;;  %v4148_v49 = vrot.slane %v3989_v7, %v5377_v8 }
 0x51d   :  { %v4042_v56 = vrot.slane %v4014_v52, %v5377_v8  ;;  %v4045_v57 = vcombine.high %v4035_v43, %v4035_v43  ;;  %v6710_v53 = vrot.slane %v4110_v10, %v5377_v8  ;;  %v4155_v54 = vrot.slane %v4141_v16, %v5377_v8 }
 0x51e   :  { %v4044_v2 = vcombine.high %v4028_v59, %v4028_v59  ;;  %v4091_v34 = vcombine.high %v6697_v31, %v6697_v31  ;;  %v4092_v19 = vcombine.high %v6700_v63, %v6700_v63  ;;  %v4156_v21 = vcombine.high %v4148_v49, %v4148_v49 }
 0x51f   :  { %v4124_v23 = vrot.slane %v4108_v35, %v5377_v8  ;;  %v4157_v36 = vcombine.high %v4155_v54, %v4155_v54  ;;  %v6719_v50 = vrot.slane %v4148_v49, %v5377_v8  ;;  %v4171_v13 = vrot.slane %v4155_v54, %v5377_v8 }
 0x520   :  { %v4093_v25 = vcombine.high %v4090_v41, %v4090_v41  ;;  %v4131_v28 = vrot.slane %v4109_v9, %v5377_v8  ;;  %v6723_v32 = vcombine.high %v4117_v46, %v4117_v46  ;;  %v4178_v39 = vrot.slane %v4156_v21, %v5377_v8 }
 0x521   :  { %v4140_v62 = vcombine.high %v6710_v53, %v6710_v53  ;;  %v4316_v60 = vpack.c.bf16 %v6692_v48, %v6692_v48  ;;  %v4317_v29 = vpack.c.bf16 %v4045_v57, %v4045_v57  ;;  %v4333_v55 = vpack.c.bf16 %v4042_v56, %v4042_v56 }
 0x522   :  { %v4185_v12 = vrot.slane %v4157_v36, %v5377_v8  ;;  %v4188_v17 = vcombine.high %v4178_v39, %v4178_v39  ;;  %v4318_v4 = vpack.c.bf16 %v4044_v2, %v4044_v2  ;;  %v4319_v47 = vpack.c.bf16 %v6700_v63, %v6700_v63 }
 0x523   :  { %v6735_v27 = vcombine.high %v6719_v50, %v6719_v50  ;;  %v4187_v44 = vcombine.high %v4171_v13, %v4171_v13  ;;  %v4320_v24 = vpack.c.bf16 %v6697_v31, %v6697_v31  ;;  %v4334_v0 = vpack.c.bf16 %v4069_v37, %v4069_v37 }
 0x524   :  { %v4321_v5 = vpack.c.bf16 %v4093_v25, %v4093_v25  ;;  %v4332_v15 = vpack.c.bf16 %v4043_v61, %v4043_v61  ;;  %v4335_v14 = vpack.c.bf16 %v4092_v19, %v4092_v19  ;;  %v4336_v3 = vpack.c.bf16 %v4091_v34, %v4091_v34  ;;  %v3959_v34 = vpop.permute.xlu1 %3958 }
 0x525   :  { %v4322_v6 = vpack.c.bf16 %v6723_v32, %v6723_v32  ;;  %v4323_v30 = vpack.c.bf16 %v6710_v53, %v6710_v53  ;;  %v4337_v58 = vpack.c.bf16 %v4131_v28, %v4131_v28  ;;  %v4383_v33 = vunpack.c.l.b16 %v4333_v55 }
 0x526   :  { %v4325_v22 = vpack.c.bf16 %v4188_v17, %v4188_v17  ;;  %v4338_v51 = vpack.c.bf16 %v4124_v23, %v4124_v23  ;;  %v4339_v35 = vpack.c.bf16 %v4140_v62, %v4140_v62  ;;  %v4341_v7 = vpack.c.bf16 %v4185_v12, %v4185_v12 }
 0x527   :  { %v4324_v40 = vpack.c.bf16 %v6719_v50, %v6719_v50  ;;  %v4326_v48 = vpack.c.bf16 %v4187_v44, %v4187_v44  ;;  %v4340_v38 = vpack.c.bf16 %v6735_v27, %v6735_v27  ;;  %v4384_v52 = vunpack.c.l.b16 %v4334_v0 }
 0x528   :  { %v4382_v43 = vunpack.c.l.b16 %v4332_v15  ;;  %v4385_v10 = vunpack.c.l.b16 %v4335_v14  ;;  %v4386_v59 = vunpack.c.l.b16 %v4336_v3  ;;  %v4519_v31 = vunpack.c.l.b16 %v4317_v29 }
 0x529   :  { %v6747_v63 = vunpack.c.l.b16 %v4337_v58  ;;  %v4398_v37 = vrot.slane %v4383_v33, 7  ;;  %v4520_v9 = vunpack.c.l.b16 %v4318_v4  ;;  %v4521_v16 = vunpack.c.l.b16 %v4319_v47 }
 0x52a   :  { %v6749_v61 = vunpack.c.l.b16 %v4338_v51  ;;  %v6751_v41 = vunpack.c.l.b16 %v4339_v35  ;;  %v4391_v46 = vunpack.c.l.b16 %v4341_v7  ;;  %v4527_v49 = vunpack.c.l.b16 %v4325_v22 }
 0x52b   :  { %v4401_v56 = vrot.slane %v4384_v52, 6  ;;  %v4522_v57 = vunpack.c.l.b16 %v4320_v24  ;;  %v4534_v54 = vrot.slane %v4519_v31, 7  ;;  %v4536_v2 = vrot.slane %v4520_v9, 6 }
 0x52c   :  { %v4404_v19 = vrot.slane %v4385_v10, 5  ;;  %v4407_v21 = vrot.slane %v4386_v59, 4  ;;  %v4518_v23 = vunpack.c.l.b16 %v4316_v60  ;;  %v4523_v36 = vunpack.c.l.b16 %v4321_v5 }
 0x52d   :  { %v4528_v50 = vunpack.c.l.b16 %v4326_v48  ;;  %v4538_v13 = vrot.slane %v4521_v16, 5  ;;  %v4548_v25 = vrot.slane %v4527_v49, 7  ;;  %v4400_v28 = vsel %vm4399_vm1, %v4398_v37, %v4382_v43 }
 0x52e   :  { %v4403_v32 = vsel %vm4402_vm2, %v4401_v56, %v4400_v28  ;;  %v4535_v39 = vsel %vm4399_vm1, %v4534_v54, %v4518_v23  ;;  %v3970_v62 = vmul.f32 %v6659_v20, %v3957_v42  ;;  %v3971_v29 = vmul.f32 %v6664_v1, %v3959_v34 }
 0x52f   :  { %v4524_v55 = vunpack.c.l.b16 %v4322_v6  ;;  %v4526_v12 = vunpack.c.l.b16 %v4324_v40  ;;  %v4540_v17 = vrot.slane %v4522_v57, 4  ;;  %v4537_v60 = vsel %vm4402_vm2, %v4536_v2, %v4535_v39 }
 0x530   :  { %v4406_v4 = vsel %vm4405_vm3, %v4404_v19, %v4403_v32  ;;  %v4539_v47 = vsel %vm4405_vm3, %v4538_v13, %v4537_v60  ;;  %v3980_v27 = vmul.f32 %v6655_v45, %v3970_v62  ;;  %v3981_v44 = vmul.f32 %v6655_v45, %v3971_v29 }
 0x531   :  { %v4542_v24 = vrot.slane %v4523_v36, 3  ;;  %v4550_v0 = vrot.slane %v4528_v50, 6  ;;  %v4419_v5 = vrot.slane %v4391_v46, 7  ;;  %v4541_v20 = vsel %vm4408_vm4, %v4540_v17, %v4539_v47 }
 0x532   :  { %v4390_v15 = vunpack.c.l.b16 %v4340_v38  ;;  %v4549_v1 = vsel %vm4399_vm1, %v4548_v25, %v4526_v12  ;;  %v3990_v14 = vadd.f32 %v6678_v26, %v3980_v27  ;;  %v3991_v3 = vadd.f32 %v6678_v26, %v3981_v44 }
 0x533   :  { %v4410_v6 = vrot.slane %v6747_v63, 3  ;;  %v4413_v58 = vrot.slane %v6749_v61, 2  ;;  %v4543_v33 = vsel %vm4411_vm5, %v4542_v24, %v4541_v20  ;;  %v4409_v45 = vsel %vm4408_vm4, %v4407_v21, %v4406_v4 }
 0x534   :  { %v4189_v42 = vcombine.high %v3990_v14, %v3990_v14  ;;  %v4196_v22 = vrot.slane %v3990_v14, %v5377_v8  ;;  %v4237_v51 = vcombine.high %v3991_v3, %v3991_v3  ;;  %v4244_v35 = vrot.slane %v3991_v3, %v5377_v8 }
 0x535   :  { %v6776_v7 = vunpack.c.l.b16 %v4323_v30  ;;  %v4544_v26 = vrot.slane %v4524_v55, 2  ;;  %v4420_v40 = vsel %vm4399_vm1, %v4419_v5, %v4390_v15  ;;  %v4551_v48 = vsel %vm4402_vm2, %v4550_v0, %v4549_v1 }
 0x536   :  { %v4203_v38 = vrot.slane %v4189_v42, %v5377_v8  ;;  %v4204_v52 = vcombine.high %v4196_v22, %v4196_v22  ;;  %v4212_v43 = vrot.slane %v4196_v22, %v5377_v8  ;;  %v4251_v10 = vrot.slane %v4237_v51, %v5377_v8 }
 0x537   :  { %v4252_v59 = vcombine.high %v4244_v35, %v4244_v35  ;;  %v4260_v31 = vrot.slane %v4244_v35, %v5377_v8  ;;  %v6785_v63 = vsel %vm4414_vm6, %v4544_v26, %v4543_v33  ;;  %v4412_v53 = vsel %vm4411_vm5, %v4410_v6, %v4409_v45 }
 0x538   :  { %v4205_v30 = vcombine.high %v4203_v38, %v4203_v38  ;;  %v4219_v37 = vrot.slane %v4203_v38, %v5377_v8  ;;  %v4226_v9 = vrot.slane %v4204_v52, %v5377_v8  ;;  %v4342_v16 = vpack.c.bf16 %v4212_v43, %v4212_v43 }
 0x539   :  { %v4253_v46 = vcombine.high %v4251_v10, %v4251_v10  ;;  %v4267_v49 = vrot.slane %v4251_v10, %v5377_v8  ;;  %v4274_v56 = vrot.slane %v4252_v59, %v5377_v8  ;;  %v4282_v57 = vcombine.high %v4260_v31, %v4260_v31 }
 0x53a   :  { %v4233_v54 = vrot.slane %v4205_v30, %v5377_v8  ;;  %v4234_v2 = vcombine.high %v4219_v37, %v4219_v37  ;;  %v4235_v34 = vcombine.high %v4226_v9, %v4226_v9  ;;  %v4327_v19 = vpack.c.bf16 %v4226_v9, %v4226_v9 }
 0x53b   :  { %v4328_v21 = vpack.c.bf16 %v4219_v37, %v4219_v37  ;;  %v4392_v23 = vunpack.c.l.b16 %v4342_v16  ;;  %v4281_v36 = vrot.slane %v4253_v46, %v5377_v8  ;;  %v4330_v50 = vpack.c.bf16 %v4282_v57, %v4282_v57 }
 0x53c   :  { %v4236_v13 = vcombine.high %v4233_v54, %v4233_v54  ;;  %v4343_v25 = vpack.c.bf16 %v4235_v34, %v4235_v34  ;;  %v4344_v28 = vpack.c.bf16 %v4234_v2, %v4234_v2  ;;  %v4529_v32 = vunpack.c.l.b16 %v4327_v19 }
 0x53d   :  { %v4421_v39 = vrot.slane %v4392_v23, 6  ;;  %v4530_v62 = vunpack.c.l.b16 %v4328_v21  ;;  %v4283_v29 = vcombine.high %v4281_v36, %v4281_v36  ;;  %v4331_v55 = vpack.c.bf16 %v4281_v36, %v4281_v36 }
 0x53e   :  { %v4329_v12 = vpack.c.bf16 %v4236_v13, %v4236_v13  ;;  %v4393_v17 = vunpack.c.l.b16 %v4343_v25  ;;  %v4394_v60 = vunpack.c.l.b16 %v4344_v28  ;;  %v4552_v4 = vrot.slane %v4529_v32, 5 }
 0x53f   :  { %v4422_v47 = vsel %vm4402_vm2, %v4421_v39, %v4420_v40  ;;  %v4554_v27 = vrot.slane %v4530_v62, 4  ;;  %v4345_v44 = vpack.c.bf16 %v4274_v56, %v4274_v56  ;;  %v4346_v24 = vpack.c.bf16 %v4267_v49, %v4267_v49 }
 0x540   :  { %v4423_v0 = vrot.slane %v4393_v17, 5  ;;  %v4425_v5 = vrot.slane %v4394_v60, 4  ;;  %v4531_v20 = vunpack.c.l.b16 %v4329_v12  ;;  %v4553_v15 = vsel %vm4405_vm3, %v4552_v4, %v4551_v48 }
 0x541   :  { %v4555_v1 = vsel %vm4408_vm4, %v4554_v27, %v4553_v15  ;;  %v4347_v14 = vpack.c.bf16 %v4283_v29, %v4283_v29  ;;  %v4395_v3 = vunpack.c.l.b16 %v4345_v44  ;;  %v4396_v6 = vunpack.c.l.b16 %v4346_v24 }
 0x542   :  { %v4424_v33 = vsel %vm4405_vm3, %v4423_v0, %v4422_v47  ;;  %v4556_v45 = vrot.slane %v4531_v20, 3  ;;  %v4532_v42 = vunpack.c.l.b16 %v4330_v50  ;;  %v4533_v22 = vunpack.c.l.b16 %v4331_v55 }
 0x543   :  { %v4426_v51 = vsel %vm4408_vm4, %v4425_v5, %v4424_v33  ;;  %v4397_v35 = vunpack.c.l.b16 %v4347_v14  ;;  %v4427_v26 = vrot.slane %v4395_v3, 3  ;;  %v4429_v40 = vrot.slane %v4396_v6, 2 }
 0x544   :  { %v4557_v38 = vsel %vm4411_vm5, %v4556_v45, %v4555_v1  ;;  %v4558_v52 = vrot.slane %v4532_v42, 2  ;;  %v4560_v43 = vrot.slane %v4533_v22, 1  ;;  %v4415_v48 = vsel %vm4414_vm6, %v4413_v58, %v4412_v53 }
 0x545   :  { %v4546_v10 = vrot.slane %v6776_v7, 1  ;;  %v4428_v59 = vsel %vm4411_vm5, %v4427_v26, %v4426_v51  ;;  %v4431_v31 = vrot.slane %v4397_v35, 1  ;;  %v4416_v30 = vrot.slane %v6751_v41, 1  ;;  %v4967_v41 = vld [vmem:[%s6865_s2 + $0x6] sm:$0x3]  ;;  %s5337_s2 = smov [#allocation5]  }
 0x546   :  { %v4430_v37 = vsel %vm4414_vm6, %v4429_v40, %v4428_v59  ;;  %v4559_v9 = vsel %vm4414_vm6, %v4558_v52, %v4557_v38  ;;  %v4636_v49 = vrot.slane %v4967_v41, %v5990_v18  ;;  %v4658_v29 = vrot.slane %v4967_v41, %v5979_v11 }
 0x547   :  { %v4561_v16 = vsel %vm4417_vm7, %v4560_v43, %v4559_v9  ;;  %v4547_v46 = vsel %vm4417_vm7, %v4546_v10, %v6785_v63  ;;  %v4418_v61 = vsel %vm4417_vm7, %v4416_v30, %v4415_v48  ;;  %v4432_v58 = vsel %vm4417_vm7, %v4431_v31, %v4430_v37 }
 0x548   :  { %v4562_v53 = vpack.c.b16 %v4561_v16, %v4547_v46  ;;  %v4433_v7 = vpack.c.b16 %v4432_v58, %v4418_v61 }
 0x54a   :  { %5161 = vmatmul.mubr.msk.bf16.vlgmr.msra.gmra.mrb[24].mxu0 %vm1212_vm15, %v4562_v53  ;;  %5149 = vmatmul.mubr.msk.bf16.vlgmr.msra.gmra.mrb[20].mxu1 %vm1212_vm15, %v4433_v7 }
 0x61d   :  { %v4624_v56 = vpop.f32.mrb[24].mxu0  ;;  %v4495_v57 = vpop.f32.mrb[20].mxu1 }
 0x61e   :  { %v5162_v54 = vpop.f32.mrb[25].mxu0  ;;  %v4625_v63 = vadd.f32 %v4624_v56, %v4495_v57  ;;  %v5150_v2 = vpop.f32.mrb[21].mxu1 }
 0x61f   :  { %v4627_v34 = vpop.f32.mrb[26].mxu0  ;;  %v4498_v19 = vpop.f32.mrb[22].mxu1 }
 0x620   :  { %v4637_v21 = vadd.f32 %v4636_v49, %v4625_v63  ;;  %v5163_v23 = vpop.f32.mrb[27].mxu0  ;;  %v4628_v36 = vadd.f32 %v4627_v34, %v4498_v19  ;;  %v5151_v50 = vpop.f32.mrb[23].mxu1 }
 0x622   :  { %5278 = vtanh.f32 %v4637_v21  ;;  %v4638_v13 = vadd.f32 %v4636_v49, %v4628_v36 }
 0x624   :  { %5280 = vtanh.f32 %v4638_v13 }
 0x62c   :  { %v5279_v25 = vpop.eup %5278 }
 0x62d   :  { %v4641_v28 = vmul.f32 0.5, %v5279_v25 }
 0x62e   :  { %v5281_v32 = vpop.eup %5280 }
 0x62f   :  { %v4643_v39 = vadd.f32 0.5, %v4641_v28  ;;  %v4642_v62 = vmul.f32 0.5, %v5281_v32 }
 0x631   :  { %4647 = vrot.lane.b32.xlu1 %v4643_v39, %s5331_s22  ;;  %v4644_v18 = vadd.f32 0.5, %v4642_v62 }
 0x633   :  { %4649 = vrot.lane.b32.xlu0 %v4644_v18, %s5331_s22 }
 0x635   :  { %4662 = vrot.lane.b32.xlu1 %v4658_v29, %s5331_s22  ;;  %s4805_s22 = sshll.u32 %s5337_s2, 4  ;;  %s4806_s22 = int_to_ptr.vmem [resolvable:$true] %s4805_s22 }
 0x636   :  { %s5304_s10 = scalar_lea.vmem %s4806_s22, 256  ;;  %p5309_p9 = scmp.lt.s32.totalorder %s4806_s22, %s4806_s22 }
 0x637   :  { %p5305_p8 = scmp.ne.s32.totalorder %s4806_s22, %s5304_s10  ;;  %p5310_p10 = scmp.lt.s32.totalorder %s5304_s10, %s5304_s10 }
 0x639   :  { %p5311_p11 = por %p5310_p10, %p5309_p9 }
 0x63b   :  { %p5312_p12 = pnand %p5311_p11, %p5305_p8 }
 0x6a3   :  { %v4648_v55 = vpop.permute.xlu1 %4647 }
 0x6a4   :  { %v4653_v12 = vmul.f32 %v5279_v25, %v4648_v55 }
 0x6a5   :  { %v4650_v17 = vpop.permute.xlu0 %4649 }
 0x6a6   :  { %v4654_v60 = vmul.f32 %v5281_v32, %v4650_v17  ;;  %v4659_v4 = vmul.f32 %v4658_v29, %v4653_v12 }
 0x6a7   :  { %v4663_v47 = vpop.permute.xlu1 %4662 }
 0x6a8   :  { %v4660_v27 = vmul.f32 %v4658_v29, %v4654_v60  ;;  %v4665_v44 = vadd.f32 %v4663_v47, %v4659_v4 }
 0x6aa   :  { %v4666_v24 = vadd.f32 %v4663_v47, %v4660_v27  ;;  %v4669_v0 = vcombine.high %v4665_v44, %v4665_v44  ;;  %v4676_v5 = vrot.slane %v4665_v44, %v5377_v8 }
 0x6ac   :  { %v4683_v20 = vrot.slane %v4669_v0, %v5377_v8  ;;  %v4684_v11 = vcombine.high %v4676_v5, %v4676_v5  ;;  %v4692_v15 = vrot.slane %v4676_v5, %v5377_v8  ;;  %v4718_v1 = vcombine.high %v4666_v24, %v4666_v24 }
 0x6ad   :  { %v4725_v14 = vrot.slane %v4666_v24, %v5377_v8 }
 0x6ae   :  { %v4685_v3 = vcombine.high %v4683_v20, %v4683_v20  ;;  %v4699_v6 = vrot.slane %v4683_v20, %v5377_v8  ;;  %v4706_v33 = vrot.slane %v4684_v11, %v5377_v8  ;;  %v4714_v45 = vcombine.high %v4692_v15, %v4692_v15  ;;  %4784 = vst.msk [vmem:[#allocation5] sm:$0x1] %vm4783_vm8, %v4692_v15 }
 0x6af   :  { %v4732_v42 = vrot.slane %v4718_v1, %v5377_v8  ;;  %v4733_v22 = vcombine.high %v4725_v14, %v4725_v14  ;;  %v4741_v51 = vrot.slane %v4725_v14, %v5377_v8 }
 0x6b0   :  { %v4713_v35 = vrot.slane %v4685_v3, %v5377_v8  ;;  %v4715_v26 = vcombine.high %v4699_v6, %v4699_v6  ;;  %v4716_v40 = vcombine.high %v4706_v33, %v4706_v33  ;;  %4785 = vst.msk [vmem:[#allocation5 + $0x1] sm:$0x1] %vm4783_vm8, %v4706_v33  ;;  %4786 = vst.msk [vmem:[#allocation5 + $0x2] sm:$0x1] %vm4783_vm8, %v4714_v45 }
 0x6b1   :  { %4788 = vst.msk [vmem:[#allocation5 + $0x4] sm:$0x1] %vm4783_vm8, %v4699_v6  ;;  %v4734_v38 = vcombine.high %v4732_v42, %v4732_v42  ;;  %v4748_v52 = vrot.slane %v4732_v42, %v5377_v8  ;;  %v4755_v43 = vrot.slane %v4733_v22, %v5377_v8  ;;  %v4763_v48 = vcombine.high %v4741_v51, %v4741_v51 }
 0x6b2   :  { %4792 = vst.msk [vmem:[#allocation5 + $0x8] sm:$0x1] %vm4783_vm8, %v4741_v51  ;;  %v4717_v10 = vcombine.high %v4713_v35, %v4713_v35  ;;  %4787 = vst.msk [vmem:[#allocation5 + $0x3] sm:$0x1] %vm4783_vm8, %v4716_v40 }
 0x6b3   :  { %4789 = vst.msk [vmem:[#allocation5 + $0x5] sm:$0x1] %vm4783_vm8, %v4713_v35  ;;  %4790 = vst.msk [vmem:[#allocation5 + $0x6] sm:$0x1] %vm4783_vm8, %v4715_v26  ;;  %v4762_v59 = vrot.slane %v4734_v38, %v5377_v8  ;;  %v4764_v31 = vcombine.high %v4748_v52, %v4748_v52  ;;  %v4765_v30 = vcombine.high %v4755_v43, %v4755_v43 }
 0x6b4   :  { %4793 = vst.msk [vmem:[#allocation5 + $0x9] sm:$0x1] %vm4783_vm8, %v4755_v43  ;;  %4794 = vst.msk [vmem:[#allocation5 + $0xa] sm:$0x1] %vm4783_vm8, %v4763_v48 }
 0x6b5   :  { %4796 = vst.msk [vmem:[#allocation5 + $0xc] sm:$0x1] %vm4783_vm8, %v4748_v52  ;;  %4791 = vst.msk [vmem:[#allocation5 + $0x7] sm:$0x1] %vm4783_vm8, %v4717_v10  ;;  %v4766_v37 = vcombine.high %v4762_v59, %v4762_v59 }
 0x6b6   :  { %4795 = vst.msk [vmem:[#allocation5 + $0xb] sm:$0x1] %vm4783_vm8, %v4765_v30  ;;  %4797 = vst.msk [vmem:[#allocation5 + $0xd] sm:$0x1] %vm4783_vm8, %v4762_v59 }
 0x6b7   :  { %4798 = vst.msk [vmem:[#allocation5 + $0xe] sm:$0x1] %vm4783_vm8, %v4764_v31  ;;  %4799 = vst.msk [vmem:[#allocation5 + $0xf] sm:$0x1] %vm4783_vm8, %v4766_v37 }
 0x6b8   :  { %5315 = shalt.err (!%p5312_p12)
}
 0x6b9   :  { %s5316_s13 = scalar_lea.hbm %s6866_s3, 256 }
 0x6ba   :  { %p5317_p13 = scmp.ne.s32.totalorder %s6866_s3, %s5316_s13  ;;  %p5320_p0 = scmp.lt.u32.totalorder %s5316_s13, %s6866_s3 }
 0x6bc   :  { %p5322_p1 = pnand %p5320_p0, %p5317_p13 }
 0x6be   :  { %5325 = shalt.err (!%p5322_p1)
}
 0x6bf   :  { %s5338_s18 = smov 16   ;;  %s5339_s19 = smov 1  }
 0x6c0   :  { %4811 = dma.vmem_to_hbm [thread:$0]  %s4806_s22, 256, %s6866_s3, [#allocation4], %s5338_s18, %s5338_s18, %s5339_s19  }
 0x6c1   :  { %5328 = dma.done.wait [#allocation4], 256  }
 0x6c2   :  { %5329 = vsyncadd [#allocation4], 4294967040 }
 0x6c3   :  { %4815 = vsyncpa [#allocation3], 1 }
 0x6c4   :  { %4816 = vsyncpa [#allocation4], 1 }

</bundles_post_ra>
